<compile_context>
chip_gen: v5e
topology: v5e:2x2
jax: 0.10.0
libtpu: 0.0.40
codegen_flags: <defaults>
</compile_context>

<pallas_src>
import functools
import math
from typing import NamedTuple

import jax
import jax.numpy as jnp
from jax import lax
from jax.experimental import pallas as pl
from jax.experimental.pallas import tpu as pltpu

LEAKY_ALPHA = 0.2        # LeakyReLU negative slope ("alpha" of the module)
LANE = 128
# Clamp per-node logits before exponentiating so the factored products
# exp(-f1)*exp(-f2) stay finite in f32 wherever exp(-(f1+f2)) would be finite.
_EXP_CLAMP = 60.0


def _round_up(v, m):
    return ((v + m - 1) // m) * m


def _choose_tiles(n, block_m, block_n):
    """Row/col tile sizes + padded node count (no lcm-padding blowup)."""
    n_lane = _round_up(n, LANE)
    bm = min(_round_up(block_m, LANE), n_lane)
    bn = min(_round_up(block_n, LANE), n_lane)
    if bm % bn != 0 and bn % bm != 0:          # keep padding = round_up(n, max)
        bn = bm
    # Keep >= 2 row tiles when possible so the "parallel" axis can be split
    # across both TensorCores of a v7x megacore.
    if n_lane // bm < 2 and bm > LANE:
        bm = max(LANE, _round_up(n_lane // 2, LANE))
        if bm % bn != 0 and bn % bm != 0:
            bn = bm
    n_pad = _round_up(n, math.lcm(bm, bn))
    return bm, bn, n_pad


class AdjacencyPrep(NamedTuple):
    """Reusable (cacheable across layers / calls) adjacency preprocessing."""
    mask: jax.Array       # (n_pad, n_pad) int8 edge mask
    jmap: jax.Array       # (gi*nj,) int32 compacted nonempty j-block ids
    jcount: jax.Array     # (gi,)   int32 nonempty j-block count per row tile
    n: int
    n_pad: int
    bm: int
    bn: int
    nj: int               # max nonempty j blocks per row tile (j grid size)


def prepare_adjacency(adj, *, block_m=512, block_n=512):
    """One-time O(N^2) preprocessing: int8 mask + compacted tile occupancy."""
    n = adj.shape[0]
    bm, bn, n_pad = _choose_tiles(n, block_m, block_n)
    gi, gj = n_pad // bm, n_pad // bn

    # Compact int8 edge mask: 4x less HBM/VMEM than the dense f32 adjacency.
    mask = jnp.pad((adj != 0).astype(jnp.int8),
                   ((0, n_pad - n), (0, n_pad - n)))

    # Per-(i,j)-tile occupancy, compacted per row tile so empty tiles are
    # skipped at the DMA level via index-map remapping (not just pl.when).
    counts = mask.reshape(gi, bm, gj, bn).astype(jnp.int32).sum(axis=(1, 3))
    nonempty = counts > 0                                       # (gi, gj)
    jcount = jnp.sum(nonempty, axis=1).astype(jnp.int32)        # (gi,)
    nj = max(int(jnp.max(jcount)), 1)                           # static grid size

    # Nonempty block ids first (ascending order); past jcount repeat the last
    # valid id so the index_map returns the same block -> no fresh DMA issued.
    order = jnp.argsort(jnp.where(nonempty, 0, 1), axis=1, stable=True)
    jmap = order[:, :nj].astype(jnp.int32)                      # (gi, nj)
    step = jnp.minimum(jnp.arange(nj, dtype=jnp.int32)[None, :],
                       jnp.maximum(jcount - 1, 0)[:, None])
    jmap = jnp.take_along_axis(jmap, step, axis=1)

    # Flat 1D int32 -> tiny SMEM footprint (2D SMEM pads to (8,128) words).
    return AdjacencyPrep(mask=mask, jmap=jmap.reshape(-1), jcount=jcount,
                         n=n, n_pad=n_pad, bm=bm, bn=bn, nj=nj)


# ---------------------------------------------------------------------------
# Kernel 1: h = x @ W (+ ones column) and per-node factored attention exps
# ---------------------------------------------------------------------------
def _project_kernel(x_ref, w_ref, a1_ref, a2_ref, h_ref, ef_ref, *, d_out):
    h = jnp.dot(x_ref[...], w_ref[...], preferred_element_type=jnp.float32)

    # Per-node logit pieces (padded columns of a1/a2 are zero -> no leakage).
    f1 = jnp.sum(h * a1_ref[...], axis=-1, keepdims=True)      # (bm, 1)
    f2 = jnp.sum(h * a2_ref[...], axis=-1, keepdims=True)      # (bm, 1)
    f1 = jnp.clip(f1, -_EXP_CLAMP, _EXP_CLAMP)
    f2 = jnp.clip(f2, -_EXP_CLAMP, _EXP_CLAMP)

    # O(N) transcendentals; e_ij is rebuilt in-tile with one multiply + select.
    ef_ref[:, 0:1] = jnp.exp(-f1)
    ef_ref[:, 1:2] = jnp.exp(-LEAKY_ALPHA * f1)
    ef_ref[:, 2:3] = jnp.exp(-f2)
    ef_ref[:, 3:4] = jnp.exp(-LEAKY_ALPHA * f2)

    # Ones column at index d_out: the e @ h MXU matmul then also accumulates
    # the per-row softmax sums in an already-paid-for padded lane.
    col = lax.broadcasted_iota(jnp.int32, h.shape, 1)
    h_ref[...] = jnp.where(col == d_out, 1.0, h).astype(h_ref.dtype)


# ---------------------------------------------------------------------------
# Kernel 2: masked attention + aggregation + normalization + ELU
# ---------------------------------------------------------------------------
def _attention_kernel(jmap_ref, jcount_ref, adj_ref, hj_ref, ei_ref, ej_ref,
                      out_ref, acc_ref, *, d_out, precise):
    i = pl.program_id(0)
    jj = pl.program_id(1)

    @pl.when(jj == 0)
    def _init():
        acc_ref[...] = jnp.zeros_like(acc_ref)

    # Only compacted nonempty adjacency tiles satisfy jj < jcount; the steps
    # past the count re-use the previous blocks (no DMA) and skip all compute.
    @pl.when(jj < jcount_ref[i])
    def _compute():
        pos = ei_ref[:, 0:1] * ej_ref[0:1, :]   # exp(-(f1_i+f2_j))        (bm,bn)
        neg = ei_ref[:, 1:2] * ej_ref[1:2, :]   # exp(-alpha*(f1_i+f2_j))  (bm,bn)
        # LeakyReLU branch select without ever forming s:  s>0 <=> exp(-s)<1.
        e = jnp.where(adj_ref[...] != 0, jnp.where(pos < 1.0, pos, neg), 0.0)
        if precise:
            acc_ref[...] += jnp.dot(e, hj_ref[...],
                                    preferred_element_type=jnp.float32)
        else:
            # bf16 MXU inputs (hj is already bf16 from kernel 1), f32 accum.
            acc_ref[...] += jnp.dot(e.astype(jnp.bfloat16), hj_ref[...],
                                    preferred_element_type=jnp.float32)

    @pl.when(jj == pl.num_programs(1) - 1)
    def _finalize():
        acc = acc_ref[...]
        rsum = acc[:, d_out:d_out + 1]            # ones-column row sums (MXU)
        rsum = jnp.where(rsum > 0.0, rsum, 1.0)   # guard padded/isolated rows
        if precise:
            h_prime = acc / rsum
        else:
            h_prime = acc * pl.reciprocal(rsum, approx=True)
        # ELU (alpha = 1)
        out_ref[...] = jnp.where(h_prime > 0.0, h_prime, jnp.exp(h_prime) - 1.0)


def sparse_gat_forward(x, adj, w, a, *, block_m=512, block_n=512,
                       precise=False, adj_prep=None,
                       vmem_limit_bytes=32 * 1024 * 1024):
    """x:(N,F_in), adj:(N,N) (nonzero => edge), w:(F_in,D), a:(1,2D) -> (N,D).

    vmem_limit_bytes defaults to 32 MiB (safe on v7x's 64 MiB physical VMEM);
    on v5e/v6e (128 MiB VMEM) raise it and grow block_m first.
    """
    n, f_in = x.shape
    d_out = w.shape[1]
    dp = _round_up(d_out + 1, LANE)       # +1: ones column carries row sums

    if adj_prep is None:
        adj_prep = prepare_adjacency(adj, block_m=block_m, block_n=block_n)
    if adj_prep.n != n:
        raise ValueError("adjacency prep does not match x")
    bm, bn, n_pad, nj = adj_prep.bm, adj_prep.bn, adj_prep.n_pad, adj_prep.nj
    gi = n_pad // bm

    # Wrapper-side layout plumbing here is O(N*D) only; the O(N^2) adjacency
    # work lives in prepare_adjacency() and can be cached across layers/calls.
    x_p = jnp.pad(x.astype(jnp.float32), ((0, n_pad - n), (0, 0)))
    w_p = jnp.pad(w.astype(jnp.float32), ((0, 0), (0, dp - d_out)))
    a1_p = jnp.pad(a[:, :d_out].astype(jnp.float32), ((0, 0), (0, dp - d_out)))
    a2_p = jnp.pad(a[:, d_out:].astype(jnp.float32), ((0, 0), (0, dp - d_out)))

    h_dtype = jnp.float32 if precise else jnp.bfloat16

    # --- kernel 1: projection + per-node attention factors ------------------
    h, ef = pl.pallas_call(
        functools.partial(_project_kernel, d_out=d_out),
        out_shape=(jax.ShapeDtypeStruct((n_pad, dp), h_dtype),
                   jax.ShapeDtypeStruct((n_pad, 4), jnp.float32)),
        grid_spec=pltpu.PrefetchScalarGridSpec(
            num_scalar_prefetch=0,
            grid=(gi,),
            in_specs=[pl.BlockSpec((bm, f_in), lambda i: (i, 0)),
                      pl.BlockSpec((f_in, dp), lambda i: (0, 0)),
                      pl.BlockSpec((1, dp), lambda i: (0, 0)),
                      pl.BlockSpec((1, dp), lambda i: (0, 0))],
            out_specs=(pl.BlockSpec((bm, dp), lambda i: (i, 0)),
                       pl.BlockSpec((bm, 4), lambda i: (i, 0))),
        ),
        compiler_params=pltpu.CompilerParams(
            dimension_semantics=("parallel",),
            vmem_limit_bytes=vmem_limit_bytes),
    )(x_p, w_p, a1_p, a2_p)

    ei = ef[:, 0:2]                    # (n_pad, 2): exp(-f1), exp(-alpha*f1)
    ej = jnp.transpose(ef[:, 2:4])     # (2, n_pad): exp(-f2), exp(-alpha*f2)

    # --- kernel 2: masked attention / aggregation / normalization / ELU -----
    kernel = functools.partial(_attention_kernel, d_out=d_out, precise=precise)
    out = pl.pallas_call(
        kernel,
        out_shape=jax.ShapeDtypeStruct((n_pad, dp), jnp.float32),
        grid_spec=pltpu.PrefetchScalarGridSpec(
            num_scalar_prefetch=2,                      # jmap, jcount -> SMEM
            grid=(gi, nj),
            in_specs=[
                pl.BlockSpec((bm, bn),
                             lambda i, j, jm, jc: (i, jm[i * nj + j])),  # adj
                pl.BlockSpec((bn, dp),
                             lambda i, j, jm, jc: (jm[i * nj + j], 0)),  # h_j
                pl.BlockSpec((bm, 2), lambda i, j, jm, jc: (i, 0)),      # ei
                pl.BlockSpec((2, bn),
                             lambda i, j, jm, jc: (0, jm[i * nj + j])),  # ej
            ],
            out_specs=pl.BlockSpec((bm, dp), lambda i, j, jm, jc: (i, 0)),
            scratch_shapes=[pltpu.VMEM((bm, dp), jnp.float32)],          # acc
        ),
        compiler_params=pltpu.CompilerParams(
            dimension_semantics=("parallel", "arbitrary"),
            vmem_limit_bytes=vmem_limit_bytes),
    )(adj_prep.jmap, adj_prep.jcount, adj_prep.mask, h, ei, ej)

    return out[:n, :d_out]


def _reference(x, adj, w, a):
    """Pure-JAX reference mirroring the PyTorch forward (eval mode)."""
    d_out = w.shape[1]
    hp = lax.Precision.HIGHEST
    h = jnp.dot(x, w, precision=hp)
    f1 = jnp.dot(h, a[0, :d_out].reshape(-1, 1), precision=hp)     # (N, 1)
    f2 = jnp.dot(h, a[0, d_out:].reshape(-1, 1), precision=hp).T   # (1, N)
    s = f1 + f2
    lrelu = jnp.where(s > 0, s, LEAKY_ALPHA * s)
    e = jnp.exp(-lrelu) * (adj != 0)
    row_sum = e.sum(axis=-1, keepdims=True)
    h_prime = jnp.dot(e, h, precision=hp) / row_sum
    return jnp.where(h_prime > 0, h_prime, jnp.expm1(h_prime))


if __name__ == "__main__":
    N, F_IN, D_OUT = 1024, 32, 64

    key = jax.random.PRNGKey(0)
    k_w, k_a, k_x, k_adj = jax.random.split(key, 4)

    # Deterministic xavier_uniform_(gain=1.414), matching reset_parameters().
    gain = 1.414
    bound_w = gain * math.sqrt(6.0 / (F_IN + D_OUT))
    w = jax.random.uniform(k_w, (F_IN, D_OUT), jnp.float32, -bound_w, bound_w)
    bound_a = gain * math.sqrt(6.0 / (1 + 2 * D_OUT))
    a = jax.random.uniform(k_a, (1, 2 * D_OUT), jnp.float32, -bound_a, bound_a)

    # Node features + banded sparse adjacency with self-loops (every node has
    # at least one edge, as the reference assumes).  The band leaves whole
    # 256x256 adjacency tiles empty, exercising the DMA-level sparsity skip.
    x = jax.random.normal(k_x, (N, F_IN), jnp.float32)
    ii = jnp.arange(N)[:, None]
    cc = jnp.arange(N)[None, :]
    band = jnp.abs(ii - cc) <= 100
    rnd = jax.random.uniform(k_adj, (N, N)) < 0.15
    adj = jnp.where(band & rnd, 1.0, 0.0).astype(jnp.float32)
    adj = jnp.maximum(adj, jnp.eye(N, dtype=jnp.float32))

    ref = _reference(x, adj, w, a)

    # One-time adjacency preprocessing, reused by both calls below
    # (cacheable across layers / forward passes).
    prep = prepare_adjacency(adj, block_m=256, block_n=256)

    # Fast path: bf16 h / bf16 e on the MXU + EUP approximate reciprocal.
    out = sparse_gat_forward(x, adj, w, a, adj_prep=prep)
    out = jax.block_until_ready(out)
    assert out.shape == (N, D_OUT)
    assert not bool(jnp.any(jnp.isnan(out)))
    assert jnp.allclose(out, ref, rtol=3e-2, atol=3e-2), \
        "fast-path kernel mismatch vs reference"

    # Precise path: f32 aggregation matmul + exact divide.
    out_p = sparse_gat_forward(x, adj, w, a, adj_prep=prep, precise=True)
    out_p = jax.block_until_ready(out_p)
    assert not bool(jnp.any(jnp.isnan(out_p)))
    assert jnp.allclose(out_p, ref, rtol=1e-2, atol=1e-2), \
        "precise-path kernel mismatch vs reference"

    print("KERNEL_OK")
</pallas_src>

<mosaic_0001>
module attributes {stable_mosaic.version = 11 : i64} {
  func.func @_project_kernel(%arg0: i32, %arg1: memref<256x32xf32, #tpu.memory_space<vmem>>, %arg2: memref<32x128xf32, #tpu.memory_space<vmem>>, %arg3: memref<1x128xf32, #tpu.memory_space<vmem>>, %arg4: memref<1x128xf32, #tpu.memory_space<vmem>>, %arg5: memref<256x128xbf16, #tpu.memory_space<vmem>>, %arg6: memref<256x4xf32, #tpu.memory_space<vmem>>) attributes {dimension_semantics = [#tpu.dimension_semantics<parallel>], iteration_bounds = array<i64: 4>, scalar_prefetch = 0 : i64, scratch_operands = 0 : i64, tpu.core_type = #tpu.core_type<tc>, window_params = [{transform_indices = @transform_0, window_bounds = array<i64: 256, 32>}, {pipeline_mode = #tpu.pipeline_mode<synchronous>, transform_indices = @transform_1, window_bounds = array<i64: 32, 128>}, {pipeline_mode = #tpu.pipeline_mode<synchronous>, transform_indices = @transform_2, window_bounds = array<i64: 1, 128>}, {pipeline_mode = #tpu.pipeline_mode<synchronous>, transform_indices = @transform_3, window_bounds = array<i64: 1, 128>}, {transform_indices = @transform_4, window_bounds = array<i64: 256, 128>}, {transform_indices = @transform_5, window_bounds = array<i64: 256, 4>}]} {
    %c0 = arith.constant 0 : index
    %c0_0 = arith.constant 0 : index
    %0 = vector.load %arg1[%c0, %c0_0] : memref<256x32xf32, #tpu.memory_space<vmem>>, vector<256x32xf32>
    %c0_1 = arith.constant 0 : index
    %c0_2 = arith.constant 0 : index
    %1 = vector.load %arg2[%c0_1, %c0_2] : memref<32x128xf32, #tpu.memory_space<vmem>>, vector<32x128xf32>
    %cst = arith.constant dense<0.000000e+00> : vector<256x128xf32>
    %2 = tpu.matmul %0, %1, %cst {dimension_numbers = #tpu.dot_dimension_numbers<[1], [0], [0], [1], [0, 0, 1, 1], [], []>} : vector<256x32xf32>, vector<32x128xf32>, vector<256x128xf32> -> vector<256x128xf32>
    %c0_3 = arith.constant 0 : index
    %c0_4 = arith.constant 0 : index
    %3 = vector.load %arg3[%c0_3, %c0_4] : memref<1x128xf32, #tpu.memory_space<vmem>>, vector<1x128xf32>
    %4 = vector.broadcast %3 : vector<1x128xf32> to vector<256x128xf32>
    %5 = arith.mulf %2, %4 : vector<256x128xf32>
    %cst_5 = arith.constant dense<0.000000e+00> : vector<256xf32>
    %6 = vector.multi_reduction <add>, %5, %cst_5 [1] : vector<256x128xf32> to vector<256xf32>
    %7 = vector.shape_cast %6 : vector<256xf32> to vector<256x1xf32>
    %c0_6 = arith.constant 0 : index
    %c0_7 = arith.constant 0 : index
    %8 = vector.load %arg4[%c0_6, %c0_7] : memref<1x128xf32, #tpu.memory_space<vmem>>, vector<1x128xf32>
    %9 = vector.broadcast %8 : vector<1x128xf32> to vector<256x128xf32>
    %10 = arith.mulf %2, %9 : vector<256x128xf32>
    %cst_8 = arith.constant dense<0.000000e+00> : vector<256xf32>
    %11 = vector.multi_reduction <add>, %10, %cst_8 [1] : vector<256x128xf32> to vector<256xf32>
    %12 = vector.shape_cast %11 : vector<256xf32> to vector<256x1xf32>
    %cst_9 = arith.constant -6.000000e+01 : f32
    %cst_10 = arith.constant 6.000000e+01 : f32
    %13 = vector.broadcast %cst_9 : f32 to vector<256x1xf32>
    %14 = arith.maximumf %13, %7 : vector<256x1xf32>
    %15 = vector.broadcast %cst_10 : f32 to vector<256x1xf32>
    %16 = arith.minimumf %15, %14 : vector<256x1xf32>
    %cst_11 = arith.constant -6.000000e+01 : f32
    %cst_12 = arith.constant 6.000000e+01 : f32
    %17 = vector.broadcast %cst_11 : f32 to vector<256x1xf32>
    %18 = arith.maximumf %17, %12 : vector<256x1xf32>
    %19 = vector.broadcast %cst_12 : f32 to vector<256x1xf32>
    %20 = arith.minimumf %19, %18 : vector<256x1xf32>
    %cst_13 = arith.constant 0.000000e+00 : f32
    %21 = vector.broadcast %cst_13 : f32 to vector<256x1xf32>
    %22 = arith.subf %21, %16 : vector<256x1xf32>
    %23 = math.exp %22 : vector<256x1xf32>
    %c0_14 = arith.constant 0 : index
    %c0_15 = arith.constant 0 : index
    %24 = vector.load %arg6[%c0_14, %c0_15] : memref<256x4xf32, #tpu.memory_space<vmem>>, vector<256x1xf32>
    tpu.vector_store %arg6[%c0_14, %c0_15], %23 {strides = array<i32>} : memref<256x4xf32, #tpu.memory_space<vmem>>, vector<256x1xf32>,
    %cst_16 = arith.constant -2.000000e-01 : f32
    %25 = vector.broadcast %cst_16 : f32 to vector<256x1xf32>
    %26 = arith.mulf %25, %16 : vector<256x1xf32>
    %27 = math.exp %26 : vector<256x1xf32>
    %c0_17 = arith.constant 0 : index
    %c1 = arith.constant 1 : index
    %28 = vector.load %arg6[%c0_17, %c1] : memref<256x4xf32, #tpu.memory_space<vmem>>, vector<256x1xf32>
    tpu.vector_store %arg6[%c0_17, %c1], %27 {strides = array<i32>} : memref<256x4xf32, #tpu.memory_space<vmem>>, vector<256x1xf32>,
    %cst_18 = arith.constant 0.000000e+00 : f32
    %29 = vector.broadcast %cst_18 : f32 to vector<256x1xf32>
    %30 = arith.subf %29, %20 : vector<256x1xf32>
    %31 = math.exp %30 : vector<256x1xf32>
    %c0_19 = arith.constant 0 : index
    %c2 = arith.constant 2 : index
    %32 = vector.load %arg6[%c0_19, %c2] : memref<256x4xf32, #tpu.memory_space<vmem>>, vector<256x1xf32>
    tpu.vector_store %arg6[%c0_19, %c2], %31 {strides = array<i32>} : memref<256x4xf32, #tpu.memory_space<vmem>>, vector<256x1xf32>,
    %cst_20 = arith.constant -2.000000e-01 : f32
    %33 = vector.broadcast %cst_20 : f32 to vector<256x1xf32>
    %34 = arith.mulf %33, %20 : vector<256x1xf32>
    %35 = math.exp %34 : vector<256x1xf32>
    %c0_21 = arith.constant 0 : index
    %c3 = arith.constant 3 : index
    %36 = vector.load %arg6[%c0_21, %c3] : memref<256x4xf32, #tpu.memory_space<vmem>>, vector<256x1xf32>
    tpu.vector_store %arg6[%c0_21, %c3], %35 {strides = array<i32>} : memref<256x4xf32, #tpu.memory_space<vmem>>, vector<256x1xf32>,
    %37 = tpu.iota {dimensions = array<i32: 1>} : vector<256x128xi32>
    %c64_i32 = arith.constant 64 : i32
    %38 = vector.broadcast %c64_i32 : i32 to vector<256x128xi32>
    %39 = arith.cmpi eq, %37, %38 : vector<256x128xi32>
    %cst_22 = arith.constant 1.000000e+00 : f32
    %40 = vector.broadcast %cst_22 : f32 to vector<256x128xf32>
    %41 = arith.select %39, %40, %2 : vector<256x128xi1>, vector<256x128xf32>
    %42 = arith.truncf %41 : vector<256x128xf32> to vector<256x128xbf16>
    %c0_23 = arith.constant 0 : index
    %c0_24 = arith.constant 0 : index
    %43 = vector.load %arg5[%c0_23, %c0_24] : memref<256x128xbf16, #tpu.memory_space<vmem>>, vector<256x128xbf16>
    tpu.vector_store %arg5[%c0_23, %c0_24], %42 {strides = array<i32>} : memref<256x128xbf16, #tpu.memory_space<vmem>>, vector<256x128xbf16>,
    return
  }
  func.func @transform_0(%arg0: i32) -> (i32, i32) {
    %c0_i32 = arith.constant 0 : i32
    %c0_i32_0 = arith.constant 0 : i32
    return %arg0, %c0_i32 : i32, i32
  }
  func.func @transform_1(%arg0: i32) -> (i32, i32) {
    %c0_i32 = arith.constant 0 : i32
    %c0_i32_0 = arith.constant 0 : i32
    %c0_i32_1 = arith.constant 0 : i32
    return %c0_i32, %c0_i32_0 : i32, i32
  }
  func.func @transform_2(%arg0: i32) -> (i32, i32) {
    %c0_i32 = arith.constant 0 : i32
    %c0_i32_0 = arith.constant 0 : i32
    %c0_i32_1 = arith.constant 0 : i32
    return %c0_i32, %c0_i32_0 : i32, i32
  }
  func.func @transform_3(%arg0: i32) -> (i32, i32) {
    %c0_i32 = arith.constant 0 : i32
    %c0_i32_0 = arith.constant 0 : i32
    %c0_i32_1 = arith.constant 0 : i32
    return %c0_i32, %c0_i32_0 : i32, i32
  }
  func.func @transform_4(%arg0: i32) -> (i32, i32) {
    %c0_i32 = arith.constant 0 : i32
    %c0_i32_0 = arith.constant 0 : i32
    return %arg0, %c0_i32 : i32, i32
  }
  func.func @transform_5(%arg0: i32) -> (i32, i32) {
    %c0_i32 = arith.constant 0 : i32
    %c0_i32_0 = arith.constant 0 : i32
    return %arg0, %c0_i32 : i32, i32
  }
}

</mosaic_0001>

<bundles_post_ra>
// kernel: tpu_custom_call.1
= control target key start
LH: loop header
LB: loop body
LE: loop exit
PB: predicated region body
PF: predicated region fallthrough
CT: control target
= control target key end

     0   :  { %11 = vsyncpa [#allocation3], 0  ;;  %s2855_s0 = inlined_call_operand.vmem [shape: f32[1024,32], index: 0, kind: input, shape index: {}]   ;;  %s2856_s1 = inlined_call_operand.vmem [shape: f32[32,128], index: 1, kind: input, shape index: {}]   ;;  %s2857_s2 = inlined_call_operand.vmem [shape: f32[1,128], index: 2, kind: input, shape index: {}]   ;;  %s2858_s3 = inlined_call_operand.vmem [shape: f32[1,128], index: 3, kind: input, shape index: {}]   ;;  %s2859_s4 = inlined_call_operand.hbm [shape: bf16[1024,128], index: 4, kind: output, shape index: {0}]   ;;  %s2860_s5 = inlined_call_operand.vmem [shape: f32[1024,4], index: 5, kind: output, shape index: {1}]  }
   0x1   :  { %13 = vsyncpa [#allocation3 + $0x1], 0  ;;  %s2154_s18 = smov 0   ;;  %s2156_s19 = smov 0  }
   0x2   :  { %s2158_s20 = smov 0   ;;  %s2160_s21 = smov 0  }
   0x3 LB: > { %s2175_s22 = sadd.s32 4294967295, %s2120_s21   ;;  %s1541_s23 = sadd.s32 4294967294, %s2120_s21   ;;  %s2120_s21 = sphi %s2160_s21, %s2866_s21   ;;  %s2116_s20 = sphi %s2158_s20, %s2865_s20   ;;  %s2112_s19 = sphi %s2156_s19, %s2864_s19   ;;  %s2108_s18 = sphi %s2154_s18, %s2863_s18  }
   0x4   : > { %s2179_s24 = sadd.s32 1, %s2120_s21   ;;  %s115_s25 = sadd.s32 1, %s2116_s20 }
   0x5   : > { %s112_s26 = ssub.s32 %s2120_s21, %s2179_s24  ;;  %p125_p0 = scmp.ne.s32.totalorder %s2116_s20, %s2112_s19 }
   0x6   : > { %p113_p1 = scmp.eq.s32.totalorder %s112_s26, 0  ;;  %p126_p2 = scmp.eq.s32.totalorder %s2175_s22, 3 }
   0x7   : > { %p131_p3 = scmp.ne.s32.totalorder %s2112_s19, %s2108_s18  ;;  %p132_p4 = scmp.eq.s32.totalorder %s1541_s23, 3 }
   0x8   : > { %s2190_s27 = scalar_select %p113_p1, %s2116_s20, %s115_s25  }
   0x9   : > { %p2192_p5 = por %p126_p2, %p125_p0  ;;  %p2196_p6 = por %p132_p4, %p131_p3 }
   0xa   : > { %p1544_p7 = scmp.ge.s32.totalorder %s2120_s21, 1  ;;  %p194_p8 = scmp.lt.s32.totalorder %s2120_s21, 5 }
   0xc   : > { %p195_p9 = pnand %p1544_p7, %p194_p8 }
   0xd   : > { %s1546_s9 = sshll.u32 (!%p195_p9), %s2175_s22, 5  ;;  %s217_s6 = sand.u32 (!%p195_p9), 1, %s2112_s19  }
   0xe   : > { %198 = sbr.rel (%p195_p9) target bundleno = 455 (0x1c7), region = 36  ;;  %p228_p10 = scmp.lt.s32.totalorder (!%p195_p9), %s1546_s9, 127 }
   0xf   : > { %s1545_s7 = sshll.u32 (!%p195_p9), %s217_s6, 7 }
  0x10   : > { %s2322_s8 = scalar_lea.vmem (!%p195_p9), [#allocation2], %s1545_s7  ;;  %s2078_s7 = scalar_lea.hbm (!%p195_p9), %s2859_s4, 512 }
  0x11   : > { %s1447_s16 = sshll.u32 (!%p195_p9), %s2322_s8, 4  ;;  %s2631_s16 = int_to_ptr.vmem [resolvable:$true] %s1447_s16 }
  0x13   : > { %v275_v0 = vld [vmem:[%s2856_s1 + $0x18] sm:$0xff]  ;;  %v274_v1 = vld [vmem:[%s2856_s1 + $0x10] sm:$0xff]  ;;  %v273_v2 = vld [vmem:[%s2856_s1 + $0x8] sm:$0xff]  ;;  %s2868_s9 = smov (!%p228_p10, %s1546_s9), 127  ;;  %vm276_vm0 = vcmask 261120   ;;  %v1330_v37 = vlaneseq  ;;  %vm910_vm2 = vcmask 7168  }
  0x14   : > { %385 = vmatpush.msra.mxu0 %v275_v0  ;;  %1747 = vmatpush.msra.mxu1 %v275_v0  ;;  %v272_v3 = vld [vmem:[%s2856_s1] sm:$0xff]  ;;  %s1547_s14 = sshll.u32 %s2868_s9, 3  ;;  %vm1039_vm3 = vcmask 15368   ;;  %vm1168_vm4 = vcmask 23568   ;;  %vm1297_vm5 = vcmask 31768   ;;  %s1651_s9 = sshll.u32 %s2175_s22, 7 }
  0x15   : > { %1749 = vmatpush.msra.mxu3 %v275_v0  ;;  %1748 = vmatpush.msra.mxu2 %v275_v0  ;;  %s2223_s17 = scalar_lea.vmem %s2855_s0, %s1547_s14  ;;  %v2292_v36 = vld [vmem:[%s2857_s2] ss:$0 sm:$0xff]  ;;  %v2300_v42 = vand.u32 127, %v1330_v37  ;;  %s2530_s12 = scalar_lea.vmem %s2860_s5, %s1547_s14 }
  0x16   : > { %386 = vmatpush.msra.mxu0 %v274_v1  ;;  %1750 = vmatpush.msra.mxu1 %v274_v1  ;;  %v240_v4 = vld [vmem:[%s2223_s17] sm:$0xff]  ;;  %v241_v8 = vld [vmem:[%s2223_s17 + $0x8] sm:$0xff]  ;;  %v242_v12 = vld [vmem:[%s2223_s17 + $0x10] sm:$0xff]  ;;  %s1446_s15 = scalar_lea.hbm %s2859_s4, %s1651_s9  ;;  %s1430_s22 = scalar_lea.sflag [#allocation3], %s217_s6 }
  0x17   : > { %1752 = vmatpush.msra.mxu3 %v274_v1  ;;  %1751 = vmatpush.msra.mxu2 %v274_v1  ;;  %v248_v5 = vld [vmem:[%s2223_s17 + $0x40] sm:$0xff]  ;;  %v249_v9 = vld [vmem:[%s2223_s17 + $0x48] sm:$0xff]  ;;  %v266_v13 = vld [vmem:[%s2223_s17 + $0xd0] sm:$0xff]  ;;  %vm1332_vm1 = vcmp.eq.s32.totalorder %v2300_v42, 64 }
  0x18   : > { %387 = vmatpush.msra.mxu0 %v273_v2  ;;  %1753 = vmatpush.msra.mxu1 %v273_v2  ;;  %v264_v6 = vld [vmem:[%s2223_s17 + $0xc0] sm:$0xff]  ;;  %v265_v10 = vld [vmem:[%s2223_s17 + $0xc8] sm:$0xff]  ;;  %v250_v14 = vld [vmem:[%s2223_s17 + $0x50] sm:$0xff] }
  0x19   : > { %1755 = vmatpush.msra.mxu3 %v273_v2  ;;  %1754 = vmatpush.msra.mxu2 %v273_v2  ;;  %v256_v7 = vld [vmem:[%s2223_s17 + $0x80] sm:$0xff]  ;;  %v257_v11 = vld [vmem:[%s2223_s17 + $0x88] sm:$0xff]  ;;  %v258_v15 = vld [vmem:[%s2223_s17 + $0x90] sm:$0xff] }
  0x1a   : > { %388 = vmatpush.msra.mxu0 %v272_v3  ;;  %1756 = vmatpush.msra.mxu1 %v272_v3  ;;  %v243_v16 = vld [vmem:[%s2223_s17 + $0x18] sm:$0xff]  ;;  %v244_v20 = vld [vmem:[%s2223_s17 + $0x20] sm:$0xff]  ;;  %v245_v24 = vld [vmem:[%s2223_s17 + $0x28] sm:$0xff] }
  0x1b   : > { %1758 = vmatpush.msra.mxu3 %v272_v3  ;;  %1550 = vmatmul.msk.f32.vlgmr.msra.gmra.mxu0 %vm276_vm0, %v240_v4  ;;  %v267_v17 = vld [vmem:[%s2223_s17 + $0xd8] sm:$0xff]  ;;  %v252_v21 = vld [vmem:[%s2223_s17 + $0x60] sm:$0xff]  ;;  %v253_v25 = vld [vmem:[%s2223_s17 + $0x68] sm:$0xff] }
  0x1c   : > { %1558 = vmatmul.msk.f32.vlgmr.msra.gmra.mxu1 %vm276_vm0, %v248_v5  ;;  %1574 = vmatmul.msk.f32.vlgmr.msra.gmra.mxu3 %vm276_vm0, %v264_v6  ;;  %v251_v18 = vld [vmem:[%s2223_s17 + $0x58] sm:$0xff]  ;;  %v268_v22 = vld [vmem:[%s2223_s17 + $0xe0] sm:$0xff]  ;;  %v269_v26 = vld [vmem:[%s2223_s17 + $0xe8] sm:$0xff] }
  0x1d   : > { %1757 = vmatpush.msra.mxu2 %v272_v3  ;;  %v259_v19 = vld [vmem:[%s2223_s17 + $0x98] sm:$0xff]  ;;  %v260_v23 = vld [vmem:[%s2223_s17 + $0xa0] sm:$0xff]  ;;  %v261_v27 = vld [vmem:[%s2223_s17 + $0xa8] sm:$0xff] }
  0x1e   : > { %1566 = vmatmul.msk.f32.vlgmr.msra.gmra.mxu2 %vm276_vm0, %v256_v7  ;;  %v246_v28 = vld [vmem:[%s2223_s17 + $0x30] sm:$0xff]  ;;  %v255_v32 = vld [vmem:[%s2223_s17 + $0x78] sm:$0xff]  ;;  %v2297_v38 = vld [vmem:[%s2858_s3] ss:$0 sm:$0xff] }
  0x1f   : > { %v254_v29 = vld [vmem:[%s2223_s17 + $0x70] sm:$0xff]  ;;  %v247_v33 = vld [vmem:[%s2223_s17 + $0x38] sm:$0xff] }
  0x20   : > { %v270_v30 = vld [vmem:[%s2223_s17 + $0xf0] sm:$0xff]  ;;  %v263_v34 = vld [vmem:[%s2223_s17 + $0xb8] sm:$0xff] }
  0x21   : > { %v262_v31 = vld [vmem:[%s2223_s17 + $0xb0] sm:$0xff]  ;;  %v271_v35 = vld [vmem:[%s2223_s17 + $0xf8] sm:$0xff]  ;;  %s1449_s17 = sshll.u32 %s1446_s15, 4  ;;  %s2635_s17 = int_to_ptr.hbm [resolvable:$true] %s1449_s17 }
  0x22   : > { %s2072_s23 = sshra.s32 %s2635_s17, 4  ;;  %s2073_s23 = int_to_ptr.hbm [resolvable:$true] %s2072_s23 }
  0x23   : > { %1551 = vmatmul.msk.f32.gmra.mxu0 %vm276_vm0, %v241_v8  ;;  %s2074_s25 = scalar_lea.hbm %s2073_s23, 128  ;;  %p2079_p0 = scmp.lt.s32.totalorder %s2073_s23, %s2859_s4 }
  0x24   : > { %1559 = vmatmul.msk.f32.gmra.mxu1 %vm276_vm0, %v249_v9  ;;  %1575 = vmatmul.msk.f32.gmra.mxu3 %vm276_vm0, %v265_v10  ;;  %p2075_p11 = scmp.ne.s32.totalorder %s2073_s23, %s2074_s25  ;;  %p2080_p1 = scmp.lt.s32.totalorder %s2078_s7, %s2074_s25 }
  0x26   : > { %1567 = vmatmul.msk.f32.gmra.mxu2 %vm276_vm0, %v257_v11  ;;  %p2076_p12 = pnand %p2075_p11, %p2192_p5  ;;  %p2081_p2 = por %p2080_p1, %p2079_p0 }
  0x28   : > { %p2077_p13 = pneg %p2076_p12 }
  0x2a   : > { %p2082_p3 = pnand %p2081_p2, %p2077_p13 }
  0x2b   : > { %1552 = vmatmul.msk.f32.gmra.mxu0 %vm276_vm0, %v242_v12 }
  0x2c   : > { %1576 = vmatmul.msk.f32.gmra.mxu3 %vm276_vm0, %v266_v13  ;;  %1560 = vmatmul.msk.f32.gmra.mxu1 %vm276_vm0, %v250_v14 }
  0x2e   : > { %1568 = vmatmul.msk.f32.gmra.mxu2 %vm276_vm0, %v258_v15 }
  0x33   : > { %1553 = vmatmul.msk.f32.gmra.mxu0 %vm276_vm0, %v243_v16 }
  0x34   : > { %1577 = vmatmul.msk.f32.gmra.mxu3 %vm276_vm0, %v267_v17  ;;  %1561 = vmatmul.msk.f32.gmra.mxu1 %vm276_vm0, %v251_v18 }
  0x36   : > { %1569 = vmatmul.msk.f32.gmra.mxu2 %vm276_vm0, %v259_v19 }
  0x3b   : > { %1554 = vmatmul.msk.f32.gmra.mxu0 %vm276_vm0, %v244_v20 }
  0x3c   : > { %1562 = vmatmul.msk.f32.gmra.mxu1 %vm276_vm0, %v252_v21  ;;  %1578 = vmatmul.msk.f32.gmra.mxu3 %vm276_vm0, %v268_v22 }
  0x3e   : > { %1570 = vmatmul.msk.f32.gmra.mxu2 %vm276_vm0, %v260_v23 }
  0x43   : > { %1555 = vmatmul.msk.f32.gmra.mxu0 %vm276_vm0, %v245_v24 }
  0x44   : > { %1563 = vmatmul.msk.f32.gmra.mxu1 %vm276_vm0, %v253_v25  ;;  %1579 = vmatmul.msk.f32.gmra.mxu3 %vm276_vm0, %v269_v26 }
  0x46   : > { %1571 = vmatmul.msk.f32.gmra.mxu2 %vm276_vm0, %v261_v27 }
  0x4b   : > { %1556 = vmatmul.msk.f32.gmra.mxu0 %vm276_vm0, %v246_v28 }
  0x4c   : > { %1564 = vmatmul.msk.f32.gmra.mxu1 %vm276_vm0, %v254_v29  ;;  %1580 = vmatmul.msk.f32.gmra.mxu3 %vm276_vm0, %v270_v30 }
  0x4e   : > { %1572 = vmatmul.msk.f32.gmra.mxu2 %vm276_vm0, %v262_v31 }
  0x53   : > { %1557 = vmatmul.msk.f32.gmra.mxu0 %vm276_vm0, %v247_v33 }
  0x54   : > { %1565 = vmatmul.msk.f32.gmra.mxu1 %vm276_vm0, %v255_v32  ;;  %1581 = vmatmul.msk.f32.gmra.mxu3 %vm276_vm0, %v271_v35 }
  0x56   : > { %1573 = vmatmul.msk.f32.gmra.mxu2 %vm276_vm0, %v263_v34 }
  0x98   : > { %v390_v39 = vpop.f32.mrf.mxu0 }
  0x99   : > { %v414_v40 = vpop.f32.mrf.mxu1  ;;  %v490_v41 = vmul.f32 %v2292_v36, %v390_v39  ;;  %v1333_v49 = vsel %vm1332_vm1, 1.0, %v390_v39  ;;  %v590_v56 = vmul.f32 %v2297_v38, %v390_v39 }
  0x9a   : > { %v598_v43 = vmul.f32 %v2297_v38, %v414_v40  ;;  %v498_v44 = vmul.f32 %v2292_v36, %v414_v40  ;;  %v1341_v46 = vsel %vm1332_vm1, 1.0, %v414_v40 }
  0x9b   : > { %522 = vadd.xlane.f32.xlu0 %v490_v41 }
  0x9c   : > { %638 = vadd.xlane.f32.xlu1 %v598_v43  ;;  %538 = vadd.xlane.f32.xlu2 %v498_v44 }
  0x9f   : > { %v462_v45 = vpop.f32.mrf.mxu3 }
  0xa0   : > { %v2310_v47 = vpop.f32.mrf.mxu0  ;;  %v514_v48 = vmul.f32 %v2292_v36, %v462_v45  ;;  %v1357_v60 = vsel %vm1332_vm1, 1.0, %v462_v45  ;;  %v614_v5 = vmul.f32 %v2297_v38, %v462_v45 }
  0xa1   : > { %v1334_v50 = vsel %vm1332_vm1, 1.0, %v2310_v47  ;;  %v417_v51 = vpop.f32.mrf.mxu1  ;;  %v438_v52 = vpop.f32.mrf.mxu2  ;;  %v491_v7 = vmul.f32 %v2292_v36, %v2310_v47  ;;  %v591_v33 = vmul.f32 %v2297_v38, %v2310_v47 }
  0xa2   : > { %v1655_v53 = vpack.c.bf16 %v1334_v50, %v1333_v49  ;;  %v1342_v54 = vsel %vm1332_vm1, 1.0, %v417_v51  ;;  %v506_v55 = vmul.f32 %v2292_v36, %v438_v52  ;;  %v606_v59 = vmul.f32 %v2297_v38, %v438_v52 }
  0xa3   : > { %v1675_v57 = vpack.c.bf16 %v1342_v54, %v1341_v46  ;;  %570 = vadd.xlane.f32.xlu0 %v514_v48  ;;  %v1349_v61 = vsel %vm1332_vm1, 1.0, %v438_v52  ;;  %v599_v11 = vmul.f32 %v2297_v38, %v417_v51  ;;  %v499_v21 = vmul.f32 %v2292_v36, %v417_v51 }
  0xa4   : > { %1656 = vst [vmem:[%s2322_s8] sm:$0xff] %v1655_v53   ;;  %554 = vadd.xlane.f32.xlu1 %v506_v55  ;;  %622 = vadd.xlane.f32.xlu2 %v590_v56 }
  0xa5   : > { %1735 = vst [vmem:[%s2322_s8 + $0x20] sm:$0xff] %v1675_v57  }
  0xa7   : > { %v465_v58 = vpop.f32.mrf.mxu3 }
  0xa8   : > { %v1358_v62 = vsel %vm1332_vm1, 1.0, %v465_v58  ;;  %v515_v63 = vmul.f32 %v2292_v36, %v465_v58  ;;  %v396_v0 = vpop.f32.mrf.mxu0  ;;  %v615_v39 = vmul.f32 %v2297_v38, %v465_v58 }
  0xa9   : > { %v1715_v1 = vpack.c.bf16 %v1358_v62, %v1357_v60  ;;  %v441_v2 = vpop.f32.mrf.mxu2  ;;  %v2334_v3 = vpop.f32.mrf.mxu1  ;;  %v1335_v8 = vsel %vm1332_vm1, 1.0, %v396_v0  ;;  %v492_v24 = vmul.f32 %v2292_v36, %v396_v0  ;;  %v592_v40 = vmul.f32 %v2297_v38, %v396_v0 }
  0xaa   : > { %v1350_v4 = vsel %vm1332_vm1, 1.0, %v441_v2  ;;  %v607_v10 = vmul.f32 %v2297_v38, %v441_v2  ;;  %v1343_v13 = vsel %vm1332_vm1, 1.0, %v2334_v3  ;;  %v507_v23 = vmul.f32 %v2292_v36, %v441_v2 }
  0xab   : > { %1743 = vst [vmem:[%s2322_s8 + $0x60] sm:$0xff] %v1715_v1   ;;  %v1695_v6 = vpack.c.bf16 %v1350_v4, %v1349_v61  ;;  %654 = vadd.xlane.f32.xlu0 %v606_v59  ;;  %v500_v32 = vmul.f32 %v2292_v36, %v2334_v3  ;;  %v600_v52 = vmul.f32 %v2297_v38, %v2334_v3 }
  0xac   : > { %572 = vadd.xlane.f32.xlu1 %v515_v63  ;;  %670 = vadd.xlane.f32.xlu2 %v614_v5 }
  0xad   : > { %1739 = vst [vmem:[%s2322_s8 + $0x40] sm:$0xff] %v1695_v6  }
  0xaf   : > { %v468_v9 = vpop.f32.mrf.mxu3 }
  0xb0   : > { %v2347_v12 = vpop.f32.mrf.mxu0  ;;  %v1359_v20 = vsel %vm1332_vm1, 1.0, %v468_v9  ;;  %v516_v31 = vmul.f32 %v2292_v36, %v468_v9  ;;  %v616_v53 = vmul.f32 %v2297_v38, %v468_v9 }
  0xb1   : > { %v1336_v14 = vsel %vm1332_vm1, 1.0, %v2347_v12  ;;  %v2355_v15 = vpop.f32.mrf.mxu1  ;;  %v2357_v16 = vpop.f32.mrf.mxu2  ;;  %v593_v59 = vmul.f32 %v2297_v38, %v2347_v12  ;;  %v493_v60 = vmul.f32 %v2292_v36, %v2347_v12 }
  0xb2   : > { %v1660_v17 = vpack.c.bf16 %v1336_v14, %v1335_v8  ;;  %v1344_v18 = vsel %vm1332_vm1, 1.0, %v2355_v15  ;;  %v1351_v25 = vsel %vm1332_vm1, 1.0, %v2357_v16  ;;  %v608_v37 = vmul.f32 %v2297_v38, %v2357_v16 }
  0xb3   : > { %524 = vadd.xlane.f32.xlu0 %v491_v7  ;;  %v1680_v19 = vpack.c.bf16 %v1344_v18, %v1343_v13  ;;  %v501_v51 = vmul.f32 %v2292_v36, %v2355_v15  ;;  %v508_v61 = vmul.f32 %v2292_v36, %v2357_v16  ;;  %v601_v4 = vmul.f32 %v2297_v38, %v2355_v15 }
  0xb4   : > { %656 = vadd.xlane.f32.xlu1 %v607_v10  ;;  %640 = vadd.xlane.f32.xlu2 %v599_v11  ;;  %1732 = vst [vmem:[%s2322_s8 + $0x8] sm:$0xff] %v1660_v17  }
  0xb5   : > { %1736 = vst [vmem:[%s2322_s8 + $0x28] sm:$0xff] %v1680_v19  }
  0xb7   : > { %v471_v22 = vpop.f32.mrf.mxu3 }
  0xb8   : > { %v1360_v26 = vsel %vm1332_vm1, 1.0, %v471_v22  ;;  %v2386_v34 = vpop.f32.mrf.mxu0  ;;  %v517_v2 = vmul.f32 %v2292_v36, %v471_v22  ;;  %v617_v3 = vmul.f32 %v2297_v38, %v471_v22 }
  0xb9   : > { %v1720_v27 = vpack.c.bf16 %v1360_v26, %v1359_v20  ;;  %v2374_v28 = vpop.f32.mrf.mxu2  ;;  %v426_v35 = vpop.f32.mrf.mxu1  ;;  %v1337_v41 = vsel %vm1332_vm1, 1.0, %v2386_v34  ;;  %v494_v7 = vmul.f32 %v2292_v36, %v2386_v34  ;;  %v594_v15 = vmul.f32 %v2297_v38, %v2386_v34 }
  0xba   : > { %v1352_v29 = vsel %vm1332_vm1, 1.0, %v2374_v28  ;;  %v1345_v43 = vsel %vm1332_vm1, 1.0, %v426_v35  ;;  %v609_v5 = vmul.f32 %v2297_v38, %v2374_v28  ;;  %v509_v6 = vmul.f32 %v2292_v36, %v2374_v28 }
  0xbb   : > { %540 = vadd.xlane.f32.xlu0 %v499_v21  ;;  %1744 = vst [vmem:[%s2322_s8 + $0x68] sm:$0xff] %v1720_v27   ;;  %v1700_v30 = vpack.c.bf16 %v1352_v29, %v1351_v25  ;;  %v502_v8 = vmul.f32 %v2292_v36, %v426_v35  ;;  %v602_v10 = vmul.f32 %v2297_v38, %v426_v35 }
  0xbc   : > { %556 = vadd.xlane.f32.xlu2 %v507_v23  ;;  %526 = vadd.xlane.f32.xlu1 %v492_v24 }
  0xbd   : > { %1740 = vst [vmem:[%s2322_s8 + $0x48] sm:$0xff] %v1700_v30  }
  0xbf   : > { %v2407_v48 = vpop.f32.mrf.mxu3 }
  0xc0   : > { %v2397_v44 = vpop.f32.mrf.mxu0  ;;  %v1361_v54 = vsel %vm1332_vm1, 1.0, %v2407_v48  ;;  %v518_v9 = vmul.f32 %v2292_v36, %v2407_v48  ;;  %v618_v28 = vmul.f32 %v2297_v38, %v2407_v48 }
  0xc1   : > { %v2399_v45 = vpop.f32.mrf.mxu1  ;;  %v1338_v46 = vsel %vm1332_vm1, 1.0, %v2397_v44  ;;  %v450_v55 = vpop.f32.mrf.mxu2  ;;  %v495_v25 = vmul.f32 %v2292_v36, %v2397_v44  ;;  %v595_v34 = vmul.f32 %v2297_v38, %v2397_v44 }
  0xc2   : > { %v1346_v47 = vsel %vm1332_vm1, 1.0, %v2399_v45  ;;  %v1665_v49 = vpack.c.bf16 %v1338_v46, %v1337_v41  ;;  %v1353_v62 = vsel %vm1332_vm1, 1.0, %v450_v55  ;;  %v610_v13 = vmul.f32 %v2297_v38, %v450_v55 }
  0xc3   : > { %624 = vadd.xlane.f32.xlu0 %v591_v33  ;;  %v1685_v50 = vpack.c.bf16 %v1346_v47, %v1345_v43  ;;  %v510_v14 = vmul.f32 %v2292_v36, %v450_v55  ;;  %v503_v24 = vmul.f32 %v2292_v36, %v2399_v45  ;;  %v603_v29 = vmul.f32 %v2297_v38, %v2399_v45 }
  0xc4   : > { %574 = vadd.xlane.f32.xlu2 %v516_v31  ;;  %542 = vadd.xlane.f32.xlu1 %v500_v32  ;;  %1733 = vst [vmem:[%s2322_s8 + $0x10] sm:$0xff] %v1665_v49  }
  0xc5   : > { %1737 = vst [vmem:[%s2322_s8 + $0x30] sm:$0xff] %v1685_v50  }
  0xc7   : > { %v2419_v56 = vpop.f32.mrf.mxu3 }
  0xc8   : > { %v1362_v57 = vsel %vm1332_vm1, 1.0, %v2419_v56  ;;  %v2453_v11 = vpop.f32.mrf.mxu0  ;;  %v519_v35 = vmul.f32 %v2292_v36, %v2419_v56 }
  0xc9   : > { %v1725_v58 = vpack.c.bf16 %v1362_v57, %v1361_v54  ;;  %v2433_v63 = vpop.f32.mrf.mxu2  ;;  %v2455_v12 = vpop.f32.mrf.mxu1  ;;  %v1339_v18 = vsel %vm1332_vm1, 1.0, %v2453_v11 }
  0xca   : > { %v1354_v0 = vsel %vm1332_vm1, 1.0, %v2433_v63  ;;  %v1347_v19 = vsel %vm1332_vm1, 1.0, %v2455_v12  ;;  %v511_v47 = vmul.f32 %v2292_v36, %v2433_v63  ;;  %v604_v42 = vmul.f32 %v2297_v38, %v2455_v12 }
  0xcb   : > { %672 = vadd.xlane.f32.xlu0 %v615_v39  ;;  %1745 = vst [vmem:[%s2322_s8 + $0x70] sm:$0xff] %v1725_v58   ;;  %v1705_v1 = vpack.c.bf16 %v1354_v0, %v1353_v62  ;;  %v611_v50 = vmul.f32 %v2297_v38, %v2433_v63 }
  0xcc   : > { %658 = vadd.xlane.f32.xlu2 %v608_v37  ;;  %626 = vadd.xlane.f32.xlu1 %v592_v40 }
  0xcd   : > { %1741 = vst [vmem:[%s2322_s8 + $0x50] sm:$0xff] %v1705_v1  }
  0xcf   : > { %v2479_v23 = vpop.f32.mrf.mxu3 }
  0xd0   : > { %v2461_v16 = vpop.f32.mrf.mxu0  ;;  %v1363_v31 = vsel %vm1332_vm1, 1.0, %v2479_v23 }
  0xd1   : > { %v2463_v17 = vpop.f32.mrf.mxu1  ;;  %v1340_v20 = vsel %vm1332_vm1, 1.0, %v2461_v16  ;;  %v2477_v22 = vpop.f32.mrf.mxu2 }
  0xd2   : > { %v1348_v21 = vsel %vm1332_vm1, 1.0, %v2463_v17  ;;  %v1670_v26 = vpack.c.bf16 %v1340_v20, %v1339_v18  ;;  %v1355_v30 = vsel %vm1332_vm1, 1.0, %v2477_v22 }
  0xd3   : > { %642 = vadd.xlane.f32.xlu0 %v600_v52  ;;  %v1690_v27 = vpack.c.bf16 %v1348_v21, %v1347_v19 }
  0xd4   : > { %544 = vadd.xlane.f32.xlu2 %v501_v51  ;;  %674 = vadd.xlane.f32.xlu1 %v616_v53  ;;  %1734 = vst [vmem:[%s2322_s8 + $0x18] sm:$0xff] %v1670_v26  }
  0xd5   : > { %1738 = vst [vmem:[%s2322_s8 + $0x38] sm:$0xff] %v1690_v27  }
  0xd7   : > { %v2499_v33 = vpop.f32.mrf.mxu3 }
  0xd8   : > { %v1364_v39 = vsel %vm1332_vm1, 1.0, %v2499_v33 }
  0xd9   : > { %v2497_v32 = vpop.f32.mrf.mxu2  ;;  %v1730_v41 = vpack.c.bf16 %v1364_v39, %v1363_v31  ;;  %v520_v39 = vmul.f32 %v2292_v36, %v2479_v23 }
  0xda   : > { %v1356_v37 = vsel %vm1332_vm1, 1.0, %v2497_v32 }
  0xdb   : > { %558 = vadd.xlane.f32.xlu0 %v508_v61  ;;  %v1710_v40 = vpack.c.bf16 %v1356_v37, %v1355_v30  ;;  %1746 = vst [vmem:[%s2322_s8 + $0x78] sm:$0xff] %v1730_v41  }
  0xdc   : > { %628 = vadd.xlane.f32.xlu2 %v593_v59  ;;  %528 = vadd.xlane.f32.xlu1 %v493_v60 }
  0xdd   : > { %1742 = vst [vmem:[%s2322_s8 + $0x58] sm:$0xff] %v1710_v40  }
  0xe3   : > { %576 = vadd.xlane.f32.xlu0 %v517_v2 }
  0xe4   : > { %676 = vadd.xlane.f32.xlu2 %v617_v3  ;;  %644 = vadd.xlane.f32.xlu1 %v601_v4  ;;  %v512_v4 = vmul.f32 %v2292_v36, %v2477_v22 }
  0xeb   : > { %660 = vadd.xlane.f32.xlu0 %v609_v5  ;;  %v496_v5 = vmul.f32 %v2292_v36, %v2453_v11 }
  0xec   : > { %560 = vadd.xlane.f32.xlu1 %v509_v6  ;;  %530 = vadd.xlane.f32.xlu2 %v494_v7 }
  0xf3   : > { %546 = vadd.xlane.f32.xlu0 %v502_v8  ;;  %v504_v8 = vmul.f32 %v2292_v36, %v2455_v12 }
  0xf4   : > { %578 = vadd.xlane.f32.xlu1 %v518_v9  ;;  %646 = vadd.xlane.f32.xlu2 %v602_v10 }
  0xfb   : > { %630 = vadd.xlane.f32.xlu0 %v594_v15 }
  0xfc   : > { %662 = vadd.xlane.f32.xlu1 %v610_v13  ;;  %562 = vadd.xlane.f32.xlu2 %v510_v14 }
 0x103   : > { %678 = vadd.xlane.f32.xlu0 %v618_v28 }
 0x104   : > { %548 = vadd.xlane.f32.xlu1 %v503_v24  ;;  %532 = vadd.xlane.f32.xlu2 %v495_v25 }
 0x10b   : > { %648 = vadd.xlane.f32.xlu0 %v603_v29 }
 0x10c   : > { %632 = vadd.xlane.f32.xlu1 %v595_v34  ;;  %580 = vadd.xlane.f32.xlu2 %v519_v35 }
 0x10e   : > { %v523_v43 = vpop.xlane.xlu0 %522 }
 0x10f   : > { %v639_v44 = vpop.xlane.xlu1 %638  ;;  %v539_v45 = vpop.xlane.xlu2 %538  ;;  %v1582_v46 = vclamps-f32 %v523_v43, 60.0 }
 0x110   : > { %v1622_v48 = vclamps-f32 %v639_v44, 60.0  ;;  %v1590_v49 = vclamps-f32 %v539_v45, 60.0  ;;  %v497_v44 = vmul.f32 %v2292_v36, %v2461_v16 }
 0x111   : > { %v814_v51 = vsub.f32 0.0, %v1582_v46  ;;  %v943_v52 = vmul.f32 -0.2, %v1582_v46 }
 0x112   : > { %v1080_v53 = vsub.f32 0.0, %v1622_v48  ;;  %v1209_v54 = vmul.f32 -0.2, %v1622_v48  ;;  %v822_v55 = vsub.f32 0.0, %v1590_v49  ;;  %v951_v57 = vmul.f32 -0.2, %v1590_v49 }
 0x113   : > { %v846_v58 = vmul.f32 1.442695, %v814_v51  ;;  %564 = vadd.xlane.f32.xlu0 %v511_v47  ;;  %v975_v0 = vmul.f32 1.442695, %v943_v52  ;;  %v596_v47 = vmul.f32 %v2297_v38, %v2453_v11 }
 0x114   : > { %v1120_v59 = vmul.f32 1.442695, %v1080_v53  ;;  %v1249_v60 = vmul.f32 1.442695, %v1209_v54  ;;  %v862_v61 = vmul.f32 1.442695, %v822_v55  ;;  %650 = vadd.xlane.f32.xlu1 %v604_v42  ;;  %664 = vadd.xlane.f32.xlu2 %v611_v50 }
 0x115   : > { %v991_v62 = vmul.f32 1.442695, %v951_v57  ;;  %1802 = vpow2.f32 %v846_v58 }
 0x116   : > { %1804 = vpow2.f32 %v1120_v59  ;;  %v571_v1 = vpop.xlane.xlu0 %570 }
 0x117   : > { %1806 = vpow2.f32 %v1249_v60  ;;  %v555_v63 = vpop.xlane.xlu1 %554  ;;  %v623_v2 = vpop.xlane.xlu2 %622  ;;  %v1606_v3 = vclamps-f32 %v571_v1, 60.0 }
 0x118   : > { %1808 = vpow2.f32 %v862_v61  ;;  %v1598_v6 = vclamps-f32 %v555_v63, 60.0  ;;  %v1614_v7 = vclamps-f32 %v623_v2, 60.0 }
 0x119   : > { %1810 = vpow2.f32 %v991_v62  ;;  %v838_v9 = vsub.f32 0.0, %v1606_v3  ;;  %v967_v10 = vmul.f32 -0.2, %v1606_v3 }
 0x11a   : > { %1812 = vpow2.f32 %v975_v0  ;;  %v830_v13 = vsub.f32 0.0, %v1598_v6  ;;  %v959_v14 = vmul.f32 -0.2, %v1598_v6  ;;  %v1072_v15 = vsub.f32 0.0, %v1614_v7 }
 0x11b   : > { %v1803_v18 = vpop.eup %1802  ;;  %v1201_v19 = vmul.f32 -0.2, %v1614_v7  ;;  %v894_v20 = vmul.f32 1.442695, %v838_v9  ;;  %534 = vadd.xlane.f32.xlu0 %v496_v5  ;;  %v1023_v29 = vmul.f32 1.442695, %v967_v10  ;;  %v521_v5 = vmul.f32 %v2292_v36, %v2499_v33 }
 0x11c   : > { %v1805_v12 = vpop.eup %1804  ;;  %911 = vst.msk [vmem:[%s2530_s12] sm:$0xff] %vm910_vm2, %v1803_v18  ;;  %v878_v21 = vmul.f32 1.442695, %v830_v13  ;;  %v1007_v24 = vmul.f32 1.442695, %v959_v14  ;;  %566 = vadd.xlane.f32.xlu1 %v512_v4  ;;  %550 = vadd.xlane.f32.xlu2 %v504_v8  ;;  %v605_v4 = vmul.f32 %v2297_v38, %v2463_v17  ;;  %v612_v7 = vmul.f32 %v2297_v38, %v2477_v22 }
 0x11d   : > { %v1807_v25 = vpop.eup %1806  ;;  %v1104_v26 = vmul.f32 1.442695, %v1072_v15  ;;  %v1233_v27 = vmul.f32 1.442695, %v1201_v19  ;;  %1814 = vpow2.f32 %v894_v20 }
 0x11e   : > { %v1809_v28 = vpop.eup %1808  ;;  %1816 = vpow2.f32 %v878_v21  ;;  %v655_v30 = vpop.xlane.xlu0 %654  ;;  %v513_v21 = vmul.f32 %v2292_v36, %v2497_v32 }
 0x11f   : > { %v1811_v31 = vpop.eup %1810  ;;  %919 = vst.msk [vmem:[%s2530_s12 + $0x40] sm:$0xff] %vm910_vm2, %v1809_v28  ;;  %1818 = vpow2.f32 %v1007_v24  ;;  %v573_v34 = vpop.xlane.xlu1 %572  ;;  %v1630_v37 = vclamps-f32 %v655_v30, 60.0  ;;  %v613_v30 = vmul.f32 %v2297_v38, %v2497_v32 }
 0x120   : > { %v671_v35 = vpop.xlane.xlu2 %670  ;;  %v1813_v40 = vpop.eup %1812  ;;  %1048 = vst.msk [vmem:[%s2530_s12 + $0x40] sm:$0xff] %vm1039_vm3, %v1811_v31  ;;  %1820 = vpow2.f32 %v1104_v26  ;;  %v1607_v41 = vclamps-f32 %v573_v34, 60.0 }
 0x121   : > { %v1638_v43 = vclamps-f32 %v671_v35, 60.0  ;;  %1177 = vst.msk [vmem:[%s2530_s12 + $0x40] sm:$0xff] %vm1168_vm4, %v1805_v12  ;;  %1822 = vpow2.f32 %v1233_v27  ;;  %v1088_v45 = vsub.f32 0.0, %v1630_v37  ;;  %v1217_v46 = vmul.f32 -0.2, %v1630_v37 }
 0x122   : > { %1306 = vst.msk [vmem:[%s2530_s12 + $0x40] sm:$0xff] %vm1297_vm5, %v1807_v25  ;;  %1824 = vpow2.f32 %v1023_v29  ;;  %v839_v48 = vsub.f32 0.0, %v1607_v41  ;;  %v968_v49 = vmul.f32 -0.2, %v1607_v41  ;;  %v505_v29 = vmul.f32 %v2292_v36, %v2463_v17 }
 0x123   : > { %v1096_v42 = vsub.f32 0.0, %v1638_v43  ;;  %v1815_v50 = vpop.eup %1814  ;;  %1040 = vst.msk [vmem:[%s2530_s12] sm:$0xff] %vm1039_vm3, %v1813_v40  ;;  %v1225_v51 = vmul.f32 -0.2, %v1638_v43  ;;  %v1136_v52 = vmul.f32 1.442695, %v1088_v45  ;;  %582 = vadd.xlane.f32.xlu0 %v520_v39 }
 0x124   : > { %v1817_v53 = vpop.eup %1816  ;;  %935 = vst.msk [vmem:[%s2530_s12 + $0xc0] sm:$0xff] %vm910_vm2, %v1815_v50  ;;  %v896_v54 = vmul.f32 1.442695, %v839_v48  ;;  %v1025_v11 = vmul.f32 1.442695, %v968_v49  ;;  %634 = vadd.xlane.f32.xlu2 %v596_v47  ;;  %536 = vadd.xlane.f32.xlu1 %v497_v44 }
 0x125   : > { %v1819_v55 = vpop.eup %1818  ;;  %927 = vst.msk [vmem:[%s2530_s12 + $0x80] sm:$0xff] %vm910_vm2, %v1817_v53  ;;  %v1152_v57 = vmul.f32 1.442695, %v1096_v42  ;;  %v1281_v58 = vmul.f32 1.442695, %v1225_v51  ;;  %1826 = vpow2.f32 %v1136_v52  ;;  %v619_v52 = vmul.f32 %v2297_v38, %v2419_v56 }
 0x126   : > { %v1821_v59 = vpop.eup %1820  ;;  %1056 = vst.msk [vmem:[%s2530_s12 + $0x80] sm:$0xff] %vm1039_vm3, %v1819_v55  ;;  %1828 = vpow2.f32 %v896_v54  ;;  %v1265_v60 = vmul.f32 1.442695, %v1217_v46  ;;  %v525_v61 = vpop.xlane.xlu0 %524 }
 0x127   : > { %v1823_v62 = vpop.eup %1822  ;;  %1169 = vst.msk [vmem:[%s2530_s12] sm:$0xff] %vm1168_vm4, %v1821_v59  ;;  %1830 = vpow2.f32 %v1025_v11  ;;  %v657_v0 = vpop.xlane.xlu1 %656  ;;  %v1583_v63 = vclamps-f32 %v525_v61, 60.0 }
 0x128   : > { %v641_v1 = vpop.xlane.xlu2 %640  ;;  %v1825_v2 = vpop.eup %1824  ;;  %1298 = vst.msk [vmem:[%s2530_s12] sm:$0xff] %vm1297_vm5, %v1823_v62  ;;  %1832 = vpow2.f32 %v1152_v57  ;;  %v1631_v3 = vclamps-f32 %v657_v0, 60.0  ;;  %v620_v57 = vmul.f32 %v2297_v38, %v2479_v23 }
 0x129   : > { %1064 = vst.msk [vmem:[%s2530_s12 + $0xc0] sm:$0xff] %vm1039_vm3, %v1825_v2  ;;  %1834 = vpow2.f32 %v1281_v58  ;;  %v815_v6 = vsub.f32 0.0, %v1583_v63  ;;  %v944_v8 = vmul.f32 -0.2, %v1583_v63  ;;  %v1623_v18 = vclamps-f32 %v641_v1, 60.0 }
 0x12a   : > { %1836 = vpow2.f32 %v1265_v60  ;;  %v1089_v10 = vsub.f32 0.0, %v1631_v3  ;;  %v1218_v15 = vmul.f32 -0.2, %v1631_v3  ;;  %v597_v1 = vmul.f32 %v2297_v38, %v2461_v16 }
 0x12b   : > { %v1827_v9 = vpop.eup %1826  ;;  %v848_v13 = vmul.f32 1.442695, %v815_v6  ;;  %666 = vadd.xlane.f32.xlu0 %v612_v7  ;;  %v977_v20 = vmul.f32 1.442695, %v944_v8  ;;  %v1081_v35 = vsub.f32 0.0, %v1623_v18 }
 0x12c   : > { %v1829_v14 = vpop.eup %1828  ;;  %1185 = vst.msk [vmem:[%s2530_s12 + $0x80] sm:$0xff] %vm1168_vm4, %v1827_v9  ;;  %652 = vadd.xlane.f32.xlu2 %v605_v4  ;;  %584 = vadd.xlane.f32.xlu1 %v521_v5  ;;  %v1138_v25 = vmul.f32 1.442695, %v1089_v10  ;;  %v1267_v34 = vmul.f32 1.442695, %v1218_v15 }
 0x12d   : > { %v1831_v19 = vpop.eup %1830  ;;  %936 = vst.msk [vmem:[%s2530_s12 + $0xc8] sm:$0xff] %vm910_vm2, %v1829_v14  ;;  %1838 = vpow2.f32 %v848_v13  ;;  %v1210_v40 = vmul.f32 -0.2, %v1623_v18  ;;  %v1122_v42 = vmul.f32 1.442695, %v1081_v35 }
 0x12e   : > { %v1833_v22 = vpop.eup %1832  ;;  %1065 = vst.msk [vmem:[%s2530_s12 + $0xc8] sm:$0xff] %vm1039_vm3, %v1831_v19  ;;  %v541_v12 = vpop.xlane.xlu0 %540  ;;  %1840 = vpow2.f32 %v977_v20 }
 0x12f   : > { %v1835_v24 = vpop.eup %1834  ;;  %1193 = vst.msk [vmem:[%s2530_s12 + $0xc0] sm:$0xff] %vm1168_vm4, %v1833_v22  ;;  %v1591_v27 = vclamps-f32 %v541_v12, 60.0  ;;  %v527_v28 = vpop.xlane.xlu1 %526  ;;  %1842 = vpow2.f32 %v1138_v25  ;;  %v1251_v50 = vmul.f32 1.442695, %v1210_v40 }
 0x130   : > { %v557_v26 = vpop.xlane.xlu2 %556  ;;  %v1837_v31 = vpop.eup %1836  ;;  %1322 = vst.msk [vmem:[%s2530_s12 + $0xc0] sm:$0xff] %vm1297_vm5, %v1835_v24  ;;  %v1584_v39 = vclamps-f32 %v527_v28, 60.0  ;;  %1844 = vpow2.f32 %v1267_v34  ;;  %v621_v28 = vmul.f32 %v2297_v38, %v2499_v33 }
 0x131   : > { %v1599_v37 = vclamps-f32 %v557_v26, 60.0  ;;  %1314 = vst.msk [vmem:[%s2530_s12 + $0x80] sm:$0xff] %vm1297_vm5, %v1837_v31  ;;  %v823_v41 = vsub.f32 0.0, %v1591_v27  ;;  %v952_v43 = vmul.f32 -0.2, %v1591_v27 }
 0x132   : > { %v816_v36 = vsub.f32 0.0, %v1584_v39  ;;  %v945_v47 = vmul.f32 -0.2, %v1584_v39 }
 0x133   : > { %v831_v44 = vsub.f32 0.0, %v1599_v37  ;;  %v960_v45 = vmul.f32 -0.2, %v1599_v37  ;;  %v1839_v17 = vpop.eup %1838  ;;  %v864_v32 = vmul.f32 1.442695, %v823_v41  ;;  %552 = vadd.xlane.f32.xlu0 %v505_v29 }
 0x134   : > { %v993_v46 = vmul.f32 1.442695, %v952_v43  ;;  %912 = vst.msk [vmem:[%s2530_s12 + $0x8] sm:$0xff] %vm910_vm2, %v1839_v17  ;;  %568 = vadd.xlane.f32.xlu2 %v513_v21  ;;  %668 = vadd.xlane.f32.xlu1 %v613_v30  ;;  %v850_v53 = vmul.f32 1.442695, %v816_v36  ;;  %v1841_v58 = vpop.eup %1840 }
 0x135   : > { %v880_v48 = vmul.f32 1.442695, %v831_v44  ;;  %v1009_v49 = vmul.f32 1.442695, %v960_v45  ;;  %1846 = vpow2.f32 %v864_v32  ;;  %v979_v59 = vmul.f32 1.442695, %v945_v47  ;;  %v1843_v62 = vpop.eup %1842 }
 0x136   : > { %v625_v51 = vpop.xlane.xlu0 %624  ;;  %1041 = vst.msk [vmem:[%s2530_s12 + $0x8] sm:$0xff] %vm1039_vm3, %v1841_v58  ;;  %v1845_v63 = vpop.eup %1844 }
 0x137   : > { %1848 = vpow2.f32 %v880_v48  ;;  %v1615_v11 = vclamps-f32 %v625_v51, 60.0  ;;  %v543_v55 = vpop.xlane.xlu1 %542 }
 0x138   : > { %1850 = vpow2.f32 %v1009_v49  ;;  %v575_v54 = vpop.xlane.xlu2 %574  ;;  %v1592_v61 = vclamps-f32 %v543_v55, 60.0 }
 0x139   : > { %1852 = vpow2.f32 %v993_v46  ;;  %v1608_v60 = vclamps-f32 %v575_v54, 60.0  ;;  %v1073_v0 = vsub.f32 0.0, %v1615_v11  ;;  %v1202_v56 = vmul.f32 -0.2, %v1615_v11 }
 0x13a   : > { %1854 = vpow2.f32 %v1122_v42  ;;  %v824_v23 = vsub.f32 0.0, %v1592_v61  ;;  %v953_v7 = vmul.f32 -0.2, %v1592_v61 }
 0x13b   : > { %1856 = vpow2.f32 %v1251_v50  ;;  %v840_v2 = vsub.f32 0.0, %v1608_v60  ;;  %v969_v3 = vmul.f32 -0.2, %v1608_v60  ;;  %v1847_v4 = vpop.eup %1846  ;;  %v1106_v5 = vmul.f32 1.442695, %v1073_v0  ;;  %636 = vadd.xlane.f32.xlu0 %v597_v1 }
 0x13c   : > { %1858 = vpow2.f32 %v850_v53  ;;  %v1235_v6 = vmul.f32 1.442695, %v1202_v56  ;;  %920 = vst.msk [vmem:[%s2530_s12 + $0x48] sm:$0xff] %vm910_vm2, %v1847_v4  ;;  %682 = vadd.xlane.f32.xlu2 %v620_v57  ;;  %680 = vadd.xlane.f32.xlu1 %v619_v52  ;;  %v866_v13 = vmul.f32 1.442695, %v824_v23 }
 0x13d   : > { %v1849_v8 = vpop.eup %1848  ;;  %1860 = vpow2.f32 %v979_v59  ;;  %v898_v9 = vmul.f32 1.442695, %v840_v2  ;;  %v1027_v16 = vmul.f32 1.442695, %v969_v3  ;;  %v995_v15 = vmul.f32 1.442695, %v953_v7 }
 0x13e   : > { %v1851_v10 = vpop.eup %1850  ;;  %928 = vst.msk [vmem:[%s2530_s12 + $0x88] sm:$0xff] %vm910_vm2, %v1849_v8  ;;  %1862 = vpow2.f32 %v1106_v5  ;;  %v673_v18 = vpop.xlane.xlu0 %672 }
 0x13f   : > { %v1853_v14 = vpop.eup %1852  ;;  %1057 = vst.msk [vmem:[%s2530_s12 + $0x88] sm:$0xff] %vm1039_vm3, %v1851_v10  ;;  %1864 = vpow2.f32 %v898_v9  ;;  %v1639_v20 = vclamps-f32 %v673_v18, 60.0  ;;  %v627_v12 = vpop.xlane.xlu1 %626 }
 0x140   : > { %v1855_v19 = vpop.eup %1854  ;;  %1186 = vst.msk [vmem:[%s2530_s12 + $0x88] sm:$0xff] %vm1168_vm4, %v1843_v62  ;;  %1866 = vpow2.f32 %v1027_v16  ;;  %v659_v22 = vpop.xlane.xlu2 %658  ;;  %v1616_v24 = vclamps-f32 %v627_v12, 60.0 }
 0x141   : > { %v1857_v21 = vpop.eup %1856  ;;  %1315 = vst.msk [vmem:[%s2530_s12 + $0x88] sm:$0xff] %vm1297_vm5, %v1845_v63  ;;  %1868 = vpow2.f32 %v1235_v6  ;;  %v1097_v26 = vsub.f32 0.0, %v1639_v20  ;;  %v1226_v27 = vmul.f32 -0.2, %v1639_v20  ;;  %v1632_v37 = vclamps-f32 %v659_v22, 60.0 }
 0x142   : > { %v1859_v25 = vpop.eup %1858  ;;  %1049 = vst.msk [vmem:[%s2530_s12 + $0x48] sm:$0xff] %vm1039_vm3, %v1853_v14  ;;  %1870 = vpow2.f32 %v866_v13  ;;  %v1074_v30 = vsub.f32 0.0, %v1616_v24  ;;  %v1203_v40 = vmul.f32 -0.2, %v1616_v24 }
 0x143   : > { %v1861_v29 = vpop.eup %1860  ;;  %1178 = vst.msk [vmem:[%s2530_s12 + $0x48] sm:$0xff] %vm1168_vm4, %v1855_v19  ;;  %1872 = vpow2.f32 %v995_v15  ;;  %v1154_v34 = vmul.f32 1.442695, %v1097_v26  ;;  %684 = vadd.xlane.f32.xlu0 %v621_v28  ;;  %v1283_v39 = vmul.f32 1.442695, %v1226_v27  ;;  %v1090_v11 = vsub.f32 0.0, %v1632_v37 }
 0x144   : > { %v1863_v31 = vpop.eup %1862  ;;  %1307 = vst.msk [vmem:[%s2530_s12 + $0x48] sm:$0xff] %vm1297_vm5, %v1857_v21  ;;  %v1108_v33 = vmul.f32 1.442695, %v1074_v30  ;;  %v1237_v45 = vmul.f32 1.442695, %v1203_v40 }
 0x145   : > { %v1865_v35 = vpop.eup %1864  ;;  %913 = vst.msk [vmem:[%s2530_s12 + $0x10] sm:$0xff] %vm910_vm2, %v1859_v25  ;;  %1874 = vpow2.f32 %v1154_v34  ;;  %v1219_v47 = vmul.f32 -0.2, %v1632_v37 }
 0x146   : > { %v1867_v38 = vpop.eup %1866  ;;  %1042 = vst.msk [vmem:[%s2530_s12 + $0x10] sm:$0xff] %vm1039_vm3, %v1861_v29  ;;  %v643_v43 = vpop.xlane.xlu0 %642  ;;  %1876 = vpow2.f32 %v1283_v39 }
 0x147   : > { %v1869_v41 = vpop.eup %1868  ;;  %937 = vst.msk [vmem:[%s2530_s12 + $0xd0] sm:$0xff] %vm910_vm2, %v1865_v35  ;;  %v1624_v17 = vclamps-f32 %v643_v43, 60.0  ;;  %v675_v32 = vpop.xlane.xlu1 %674  ;;  %1878 = vpow2.f32 %v1108_v33 }
 0x148   : > { %v1871_v44 = vpop.eup %1870  ;;  %1066 = vst.msk [vmem:[%s2530_s12 + $0xd0] sm:$0xff] %vm1039_vm3, %v1867_v38  ;;  %v545_v36 = vpop.xlane.xlu2 %544  ;;  %v1640_v49 = vclamps-f32 %v675_v32, 60.0  ;;  %1880 = vpow2.f32 %v1237_v45 }
 0x149   : > { %v1873_v46 = vpop.eup %1872  ;;  %1170 = vst.msk [vmem:[%s2530_s12 + $0x8] sm:$0xff] %vm1168_vm4, %v1863_v31  ;;  %v1593_v48 = vclamps-f32 %v545_v36, 60.0  ;;  %v1082_v42 = vsub.f32 0.0, %v1624_v17  ;;  %v1211_v50 = vmul.f32 -0.2, %v1624_v17 }
 0x14a   : > { %1299 = vst.msk [vmem:[%s2530_s12 + $0x8] sm:$0xff] %vm1297_vm5, %v1869_v41  ;;  %v1098_v53 = vsub.f32 0.0, %v1640_v49  ;;  %v1227_v61 = vmul.f32 -0.2, %v1640_v49 }
 0x14b   : > { %921 = vst.msk [vmem:[%s2530_s12 + $0x50] sm:$0xff] %vm910_vm2, %v1871_v44  ;;  %v825_v51 = vsub.f32 0.0, %v1593_v48  ;;  %v954_v52 = vmul.f32 -0.2, %v1593_v48  ;;  %v1875_v54 = vpop.eup %1874  ;;  %v1124_v55 = vmul.f32 1.442695, %v1082_v42 }
 0x14c   : > { %1050 = vst.msk [vmem:[%s2530_s12 + $0x50] sm:$0xff] %vm1039_vm3, %v1873_v46  ;;  %v1253_v57 = vmul.f32 1.442695, %v1211_v50  ;;  %v1156_v60 = vmul.f32 1.442695, %v1098_v53 }
 0x14d   : > { %1194 = vst.msk [vmem:[%s2530_s12 + $0xc8] sm:$0xff] %vm1168_vm4, %v1875_v54  ;;  %v868_v58 = vmul.f32 1.442695, %v825_v51  ;;  %v997_v59 = vmul.f32 1.442695, %v954_v52  ;;  %1882 = vpow2.f32 %v1124_v55 }
 0x14e   : > { %2085 = shalt.err (!%p2082_p3)
}
 0x14f   : > { %s2122_s6 = smov 64   ;;  %s2123_s11 = smov 4   ;;  %v1877_v62 = vpop.eup %1876  ;;  %1884 = vpow2.f32 %v868_v58  ;;  %v559_v0 = vpop.xlane.xlu0 %558  ;;  %v1140_v1 = vmul.f32 1.442695, %v1090_v11  ;;  %v1285_v63 = vmul.f32 1.442695, %v1227_v61 }
 0x150   : > { %1759 = dma.vmem_to_hbm [thread:$0]  (%p2192_p5), %s2631_s16, 2048, %s2635_s17, %s1430_s22, %s2122_s6, %s2122_s6, %s2123_s11   ;;  %v1879_v56 = vpop.eup %1878  ;;  %1886 = vpow2.f32 %v997_v59  ;;  %v1600_v2 = vclamps-f32 %v559_v0, 60.0  ;;  %v629_v3 = vpop.xlane.xlu2 %628  ;;  %v1269_v5 = vmul.f32 1.442695, %v1219_v47 }
 0x151   : > { %1323 = vst.msk [vmem:[%s2530_s12 + $0xc8] sm:$0xff] %vm1297_vm5, %v1877_v62  ;;  %v529_v23 = vpop.xlane.xlu1 %528  ;;  %v1881_v4 = vpop.eup %1880  ;;  %1888 = vpow2.f32 %v1253_v57  ;;  %v1617_v6 = vclamps-f32 %v629_v3, 60.0 }
 0x152   : > { %1171 = vst.msk [vmem:[%s2530_s12 + $0x10] sm:$0xff] %vm1168_vm4, %v1879_v56  ;;  %v1585_v7 = vclamps-f32 %v529_v23, 60.0  ;;  %1890 = vpow2.f32 %v1156_v60  ;;  %v832_v8 = vsub.f32 0.0, %v1600_v2  ;;  %v961_v9 = vmul.f32 -0.2, %v1600_v2 }
 0x153   : > { %1300 = vst.msk [vmem:[%s2530_s12 + $0x10] sm:$0xff] %vm1297_vm5, %v1881_v4  ;;  %1892 = vpow2.f32 %v1285_v63  ;;  %v1075_v16 = vsub.f32 0.0, %v1617_v6  ;;  %v1204_v10 = vmul.f32 -0.2, %v1617_v6  ;;  %v1883_v14 = vpop.eup %1882 }
 0x154   : > { %v817_v13 = vsub.f32 0.0, %v1585_v7  ;;  %1894 = vpow2.f32 %v1140_v1  ;;  %v882_v15 = vmul.f32 1.442695, %v832_v8  ;;  %v1011_v18 = vmul.f32 1.442695, %v961_v9  ;;  %1179 = vst.msk [vmem:[%s2530_s12 + $0x50] sm:$0xff] %vm1168_vm4, %v1883_v14 }
 0x155   : > { %v946_v19 = vmul.f32 -0.2, %v1585_v7  ;;  %v1885_v22 = vpop.eup %1884  ;;  %1896 = vpow2.f32 %v1269_v5  ;;  %v1110_v20 = vmul.f32 1.442695, %v1075_v16  ;;  %v1239_v12 = vmul.f32 1.442695, %v1204_v10 }
 0x156   : > { %v1887_v21 = vpop.eup %1886  ;;  %922 = vst.msk [vmem:[%s2530_s12 + $0x58] sm:$0xff] %vm910_vm2, %v1885_v22  ;;  %1898 = vpow2.f32 %v882_v15  ;;  %v852_v24 = vmul.f32 1.442695, %v817_v13 }
 0x157   : > { %v1889_v25 = vpop.eup %1888  ;;  %1051 = vst.msk [vmem:[%s2530_s12 + $0x58] sm:$0xff] %vm1039_vm3, %v1887_v21  ;;  %1900 = vpow2.f32 %v1011_v18  ;;  %v981_v26 = vmul.f32 1.442695, %v946_v19  ;;  %v577_v27 = vpop.xlane.xlu0 %576 }
 0x158   : > { %v1891_v28 = vpop.eup %1890  ;;  %1308 = vst.msk [vmem:[%s2530_s12 + $0x50] sm:$0xff] %vm1297_vm5, %v1889_v25  ;;  %1902 = vpow2.f32 %v1110_v20  ;;  %v1609_v29 = vclamps-f32 %v577_v27, 60.0  ;;  %v677_v30 = vpop.xlane.xlu2 %676 }
 0x159   : > { %v645_v31 = vpop.xlane.xlu1 %644  ;;  %v1893_v34 = vpop.eup %1892  ;;  %1195 = vst.msk [vmem:[%s2530_s12 + $0xd0] sm:$0xff] %vm1168_vm4, %v1891_v28  ;;  %1904 = vpow2.f32 %v1239_v12  ;;  %v1641_v35 = vclamps-f32 %v677_v30, 60.0 }
 0x15a   : > { %v1625_v37 = vclamps-f32 %v645_v31, 60.0  ;;  %v1895_v39 = vpop.eup %1894  ;;  %1324 = vst.msk [vmem:[%s2530_s12 + $0xd0] sm:$0xff] %vm1297_vm5, %v1893_v34  ;;  %1906 = vpow2.f32 %v852_v24  ;;  %v841_v38 = vsub.f32 0.0, %v1609_v29  ;;  %v970_v33 = vmul.f32 -0.2, %v1609_v29 }
 0x15b   : > { %v1897_v40 = vpop.eup %1896  ;;  %1908 = vpow2.f32 %v981_v26  ;;  %v1099_v41 = vsub.f32 0.0, %v1641_v35  ;;  %v1228_v43 = vmul.f32 -0.2, %v1641_v35 }
 0x15c   : > { %v1083_v44 = vsub.f32 0.0, %v1625_v37  ;;  %v1899_v45 = vpop.eup %1898  ;;  %v900_v36 = vmul.f32 1.442695, %v841_v38  ;;  %v1029_v17 = vmul.f32 1.442695, %v970_v33 }
 0x15d   : > { %v1212_v32 = vmul.f32 -0.2, %v1625_v37  ;;  %v1901_v46 = vpop.eup %1900  ;;  %929 = vst.msk [vmem:[%s2530_s12 + $0x90] sm:$0xff] %vm910_vm2, %v1899_v45  ;;  %v1158_v47 = vmul.f32 1.442695, %v1099_v41 }
 0x15e   : > { %v1287_v48 = vmul.f32 1.442695, %v1228_v43  ;;  %v1903_v49 = vpop.eup %1902  ;;  %1058 = vst.msk [vmem:[%s2530_s12 + $0x90] sm:$0xff] %vm1039_vm3, %v1901_v46  ;;  %1910 = vpow2.f32 %v900_v36  ;;  %v1126_v42 = vmul.f32 1.442695, %v1083_v44 }
 0x15f   : > { %v1905_v50 = vpop.eup %1904  ;;  %1187 = vst.msk [vmem:[%s2530_s12 + $0x90] sm:$0xff] %vm1168_vm4, %v1895_v39  ;;  %1912 = vpow2.f32 %v1029_v17  ;;  %v1255_v51 = vmul.f32 1.442695, %v1212_v32  ;;  %v661_v52 = vpop.xlane.xlu0 %660 }
 0x160   : > { %v1907_v53 = vpop.eup %1906  ;;  %1316 = vst.msk [vmem:[%s2530_s12 + $0x90] sm:$0xff] %vm1297_vm5, %v1897_v40  ;;  %1914 = vpow2.f32 %v1158_v47  ;;  %v1633_v54 = vclamps-f32 %v661_v52, 60.0  ;;  %v531_v55 = vpop.xlane.xlu2 %530 }
 0x161   : > { %v561_v11 = vpop.xlane.xlu1 %560  ;;  %v1909_v57 = vpop.eup %1908  ;;  %914 = vst.msk [vmem:[%s2530_s12 + $0x18] sm:$0xff] %vm910_vm2, %v1907_v53  ;;  %1916 = vpow2.f32 %v1287_v48  ;;  %v1586_v59 = vclamps-f32 %v531_v55, 60.0 }
 0x162   : > { %v1601_v58 = vclamps-f32 %v561_v11, 60.0  ;;  %1043 = vst.msk [vmem:[%s2530_s12 + $0x18] sm:$0xff] %vm1039_vm3, %v1909_v57  ;;  %1918 = vpow2.f32 %v1126_v42  ;;  %v1091_v60 = vsub.f32 0.0, %v1633_v54  ;;  %v1220_v61 = vmul.f32 -0.2, %v1633_v54 }
 0x163   : > { %1172 = vst.msk [vmem:[%s2530_s12 + $0x18] sm:$0xff] %vm1168_vm4, %v1903_v49  ;;  %1920 = vpow2.f32 %v1255_v51  ;;  %v818_v56 = vsub.f32 0.0, %v1586_v59  ;;  %v947_v7 = vmul.f32 -0.2, %v1586_v59 }
 0x164   : > { %v833_v62 = vsub.f32 0.0, %v1601_v58  ;;  %v962_v0 = vmul.f32 -0.2, %v1601_v58  ;;  %v1911_v1 = vpop.eup %1910  ;;  %1301 = vst.msk [vmem:[%s2530_s12 + $0x18] sm:$0xff] %vm1297_vm5, %v1905_v50  ;;  %v1142_v63 = vmul.f32 1.442695, %v1091_v60 }
 0x165   : > { %v1271_v2 = vmul.f32 1.442695, %v1220_v61  ;;  %v1913_v3 = vpop.eup %1912  ;;  %938 = vst.msk [vmem:[%s2530_s12 + $0xd8] sm:$0xff] %vm910_vm2, %v1911_v1  ;;  %v854_v6 = vmul.f32 1.442695, %v818_v56 }
 0x166   : > { %v884_v23 = vmul.f32 1.442695, %v833_v62  ;;  %v1013_v4 = vmul.f32 1.442695, %v962_v0  ;;  %v1915_v5 = vpop.eup %1914  ;;  %1067 = vst.msk [vmem:[%s2530_s12 + $0xd8] sm:$0xff] %vm1039_vm3, %v1913_v3  ;;  %1922 = vpow2.f32 %v1142_v63 }
 0x167   : > { %v1917_v8 = vpop.eup %1916  ;;  %1196 = vst.msk [vmem:[%s2530_s12 + $0xd8] sm:$0xff] %vm1168_vm4, %v1915_v5  ;;  %1924 = vpow2.f32 %v1271_v2  ;;  %v547_v9 = vpop.xlane.xlu0 %546  ;;  %v983_v10 = vmul.f32 1.442695, %v947_v7 }
 0x168   : > { %v1919_v16 = vpop.eup %1918  ;;  %1325 = vst.msk [vmem:[%s2530_s12 + $0xd8] sm:$0xff] %vm1297_vm5, %v1917_v8  ;;  %1926 = vpow2.f32 %v884_v23  ;;  %v1594_v13 = vclamps-f32 %v547_v9, 60.0  ;;  %v647_v15 = vpop.xlane.xlu2 %646 }
 0x169   : > { %v579_v14 = vpop.xlane.xlu1 %578  ;;  %v1921_v18 = vpop.eup %1920  ;;  %1180 = vst.msk [vmem:[%s2530_s12 + $0x58] sm:$0xff] %vm1168_vm4, %v1919_v16  ;;  %1928 = vpow2.f32 %v1013_v4  ;;  %v1626_v22 = vclamps-f32 %v647_v15, 60.0 }
 0x16a   : > { %v1610_v19 = vclamps-f32 %v579_v14, 60.0  ;;  %1309 = vst.msk [vmem:[%s2530_s12 + $0x58] sm:$0xff] %vm1297_vm5, %v1921_v18  ;;  %1930 = vpow2.f32 %v854_v6  ;;  %v826_v20 = vsub.f32 0.0, %v1594_v13  ;;  %v955_v12 = vmul.f32 -0.2, %v1594_v13 }
 0x16b   : > { %1932 = vpow2.f32 %v983_v10  ;;  %v1084_v25 = vsub.f32 0.0, %v1626_v22  ;;  %v1213_v29 = vmul.f32 -0.2, %v1626_v22 }
 0x16c   : > { %v842_v21 = vsub.f32 0.0, %v1610_v19  ;;  %v971_v24 = vmul.f32 -0.2, %v1610_v19  ;;  %v1923_v26 = vpop.eup %1922  ;;  %v870_v27 = vmul.f32 1.442695, %v826_v20 }
 0x16d   : > { %v999_v28 = vmul.f32 1.442695, %v955_v12  ;;  %v1925_v30 = vpop.eup %1924  ;;  %v1128_v37 = vmul.f32 1.442695, %v1084_v25  ;;  %v1257_v38 = vmul.f32 1.442695, %v1213_v29 }
 0x16e   : > { %v902_v31 = vmul.f32 1.442695, %v842_v21  ;;  %v1031_v34 = vmul.f32 1.442695, %v971_v24  ;;  %v1927_v35 = vpop.eup %1926  ;;  %1934 = vpow2.f32 %v870_v27 }
 0x16f   : > { %v1929_v39 = vpop.eup %1928  ;;  %930 = vst.msk [vmem:[%s2530_s12 + $0x98] sm:$0xff] %vm910_vm2, %v1927_v35  ;;  %1936 = vpow2.f32 %v999_v28  ;;  %v631_v33 = vpop.xlane.xlu0 %630 }
 0x170   : > { %v1931_v40 = vpop.eup %1930  ;;  %1059 = vst.msk [vmem:[%s2530_s12 + $0x98] sm:$0xff] %vm1039_vm3, %v1929_v39  ;;  %1938 = vpow2.f32 %v902_v31  ;;  %v1618_v43 = vclamps-f32 %v631_v33, 60.0  ;;  %v563_v44 = vpop.xlane.xlu2 %562 }
 0x171   : > { %v663_v41 = vpop.xlane.xlu1 %662  ;;  %v1933_v45 = vpop.eup %1932  ;;  %1188 = vst.msk [vmem:[%s2530_s12 + $0x98] sm:$0xff] %vm1168_vm4, %v1923_v26  ;;  %1940 = vpow2.f32 %v1031_v34  ;;  %v1602_v17 = vclamps-f32 %v563_v44, 60.0 }
 0x172   : > { %v1634_v36 = vclamps-f32 %v663_v41, 60.0  ;;  %1317 = vst.msk [vmem:[%s2530_s12 + $0x98] sm:$0xff] %vm1297_vm5, %v1925_v30  ;;  %1942 = vpow2.f32 %v1128_v37  ;;  %v1076_v32 = vsub.f32 0.0, %v1618_v43  ;;  %v1205_v46 = vmul.f32 -0.2, %v1618_v43 }
 0x173   : > { %915 = vst.msk [vmem:[%s2530_s12 + $0x20] sm:$0xff] %vm910_vm2, %v1931_v40  ;;  %1944 = vpow2.f32 %v1257_v38  ;;  %v834_v49 = vsub.f32 0.0, %v1602_v17  ;;  %v963_v57 = vmul.f32 -0.2, %v1602_v17 }
 0x174   : > { %v1092_v47 = vsub.f32 0.0, %v1634_v36  ;;  %v1221_v48 = vmul.f32 -0.2, %v1634_v36  ;;  %v1935_v42 = vpop.eup %1934  ;;  %1044 = vst.msk [vmem:[%s2530_s12 + $0x20] sm:$0xff] %vm1039_vm3, %v1933_v45  ;;  %v1112_v50 = vmul.f32 1.442695, %v1076_v32 }
 0x175   : > { %v1241_v51 = vmul.f32 1.442695, %v1205_v46  ;;  %v1937_v52 = vpop.eup %1936  ;;  %923 = vst.msk [vmem:[%s2530_s12 + $0x60] sm:$0xff] %vm910_vm2, %v1935_v42  ;;  %v886_v55 = vmul.f32 1.442695, %v834_v49 }
 0x176   : > { %v1144_v53 = vmul.f32 1.442695, %v1092_v47  ;;  %v1273_v54 = vmul.f32 1.442695, %v1221_v48  ;;  %v1939_v11 = vpop.eup %1938  ;;  %1052 = vst.msk [vmem:[%s2530_s12 + $0x60] sm:$0xff] %vm1039_vm3, %v1937_v52  ;;  %1946 = vpow2.f32 %v1112_v50 }
 0x177   : > { %v1941_v58 = vpop.eup %1940  ;;  %939 = vst.msk [vmem:[%s2530_s12 + $0xe0] sm:$0xff] %vm910_vm2, %v1939_v11  ;;  %v679_v59 = vpop.xlane.xlu0 %678  ;;  %v1015_v61 = vmul.f32 1.442695, %v963_v57 }
 0x178   : > { %1948 = vpow2.f32 %v1144_v53  ;;  %v1943_v60 = vpop.eup %1942  ;;  %1068 = vst.msk [vmem:[%s2530_s12 + $0xe0] sm:$0xff] %vm1039_vm3, %v1941_v58  ;;  %v1642_v0 = vclamps-f32 %v679_v59, 60.0  ;;  %v533_v56 = vpop.xlane.xlu2 %532 }
 0x179   : > { %1950 = vpow2.f32 %v1273_v54  ;;  %v549_v62 = vpop.xlane.xlu1 %548  ;;  %v1945_v1 = vpop.eup %1944  ;;  %1181 = vst.msk [vmem:[%s2530_s12 + $0x60] sm:$0xff] %vm1168_vm4, %v1943_v60  ;;  %v1587_v2 = vclamps-f32 %v533_v56, 60.0 }
 0x17a   : > { %1952 = vpow2.f32 %v1241_v51  ;;  %v1595_v63 = vclamps-f32 %v549_v62, 60.0  ;;  %1310 = vst.msk [vmem:[%s2530_s12 + $0x60] sm:$0xff] %vm1297_vm5, %v1945_v1  ;;  %v1100_v3 = vsub.f32 0.0, %v1642_v0  ;;  %v1229_v23 = vmul.f32 -0.2, %v1642_v0 }
 0x17b   : > { %1954 = vpow2.f32 %v886_v55  ;;  %v819_v6 = vsub.f32 0.0, %v1587_v2  ;;  %v948_v16 = vmul.f32 -0.2, %v1587_v2 }
 0x17c   : > { %1956 = vpow2.f32 %v1015_v61  ;;  %v827_v4 = vsub.f32 0.0, %v1595_v63  ;;  %v956_v5 = vmul.f32 -0.2, %v1595_v63  ;;  %v1947_v7 = vpop.eup %1946  ;;  %v1160_v8 = vmul.f32 1.442695, %v1100_v3 }
 0x17d   : > { %v1289_v9 = vmul.f32 1.442695, %v1229_v23  ;;  %1173 = vst.msk [vmem:[%s2530_s12 + $0x20] sm:$0xff] %vm1168_vm4, %v1947_v7  ;;  %v856_v18 = vmul.f32 1.442695, %v819_v6 }
 0x17e   : > { %v1949_v10 = vpop.eup %1948  ;;  %v872_v13 = vmul.f32 1.442695, %v827_v4  ;;  %v1001_v14 = vmul.f32 1.442695, %v956_v5  ;;  %1958 = vpow2.f32 %v1160_v8  ;;  %v985_v22 = vmul.f32 1.442695, %v948_v16 }
 0x17f   : > { %v1951_v15 = vpop.eup %1950  ;;  %v649_v20 = vpop.xlane.xlu0 %648 }
 0x180   : > { %v1953_v19 = vpop.eup %1952  ;;  %1960 = vpow2.f32 %v872_v13  ;;  %v1627_v21 = vclamps-f32 %v649_v20, 60.0  ;;  %v581_v25 = vpop.xlane.xlu2 %580 }
 0x181   : > { %v1955_v12 = vpop.eup %1954  ;;  %1302 = vst.msk [vmem:[%s2530_s12 + $0x20] sm:$0xff] %vm1297_vm5, %v1953_v19  ;;  %1962 = vpow2.f32 %v1001_v14  ;;  %v633_v24 = vpop.xlane.xlu1 %632  ;;  %v1611_v28 = vclamps-f32 %v581_v25, 60.0 }
 0x182   : > { %v1957_v26 = vpop.eup %1956  ;;  %931 = vst.msk [vmem:[%s2530_s12 + $0xa0] sm:$0xff] %vm910_vm2, %v1955_v12  ;;  %1964 = vpow2.f32 %v1289_v9  ;;  %v1619_v27 = vclamps-f32 %v633_v24, 60.0  ;;  %v1085_v29 = vsub.f32 0.0, %v1627_v21  ;;  %v1214_v30 = vmul.f32 -0.2, %v1627_v21 }
 0x183   : > { %1060 = vst.msk [vmem:[%s2530_s12 + $0xa0] sm:$0xff] %vm1039_vm3, %v1957_v26  ;;  %1966 = vpow2.f32 %v856_v18  ;;  %v843_v35 = vsub.f32 0.0, %v1611_v28  ;;  %v972_v45 = vmul.f32 -0.2, %v1611_v28 }
 0x184   : > { %1189 = vst.msk [vmem:[%s2530_s12 + $0xa0] sm:$0xff] %vm1168_vm4, %v1949_v10  ;;  %1968 = vpow2.f32 %v985_v22  ;;  %v1077_v31 = vsub.f32 0.0, %v1619_v27  ;;  %v1206_v34 = vmul.f32 -0.2, %v1619_v27  ;;  %v1959_v37 = vpop.eup %1958  ;;  %v1130_v39 = vmul.f32 1.442695, %v1085_v29 }
 0x185   : > { %1318 = vst.msk [vmem:[%s2530_s12 + $0xa0] sm:$0xff] %vm1297_vm5, %v1951_v15  ;;  %v1259_v38 = vmul.f32 1.442695, %v1214_v30  ;;  %v904_v44 = vmul.f32 1.442695, %v843_v35 }
 0x186   : > { %v1961_v33 = vpop.eup %1960  ;;  %1197 = vst.msk [vmem:[%s2530_s12 + $0xe0] sm:$0xff] %vm1168_vm4, %v1959_v37  ;;  %v1114_v40 = vmul.f32 1.442695, %v1077_v31  ;;  %v1243_v41 = vmul.f32 1.442695, %v1206_v34  ;;  %1970 = vpow2.f32 %v1130_v39 }
 0x187   : > { %v1963_v43 = vpop.eup %1962  ;;  %924 = vst.msk [vmem:[%s2530_s12 + $0x68] sm:$0xff] %vm910_vm2, %v1961_v33  ;;  %1972 = vpow2.f32 %v1259_v38  ;;  %v565_v17 = vpop.xlane.xlu0 %564  ;;  %v1033_v46 = vmul.f32 1.442695, %v972_v45 }
 0x188   : > { %v1965_v36 = vpop.eup %1964  ;;  %1053 = vst.msk [vmem:[%s2530_s12 + $0x68] sm:$0xff] %vm1039_vm3, %v1963_v43  ;;  %1974 = vpow2.f32 %v1114_v40  ;;  %v1603_v47 = vclamps-f32 %v565_v17, 60.0  ;;  %v665_v49 = vpop.xlane.xlu2 %664 }
 0x189   : > { %v1967_v32 = vpop.eup %1966  ;;  %1326 = vst.msk [vmem:[%s2530_s12 + $0xe0] sm:$0xff] %vm1297_vm5, %v1965_v36  ;;  %v651_v48 = vpop.xlane.xlu1 %650  ;;  %1976 = vpow2.f32 %v1243_v41  ;;  %v1635_v51 = vclamps-f32 %v665_v49, 60.0 }
 0x18a   : > { %v1969_v42 = vpop.eup %1968  ;;  %916 = vst.msk [vmem:[%s2530_s12 + $0x28] sm:$0xff] %vm910_vm2, %v1967_v32  ;;  %v1628_v50 = vclamps-f32 %v651_v48, 60.0  ;;  %1978 = vpow2.f32 %v904_v44  ;;  %v835_v52 = vsub.f32 0.0, %v1603_v47  ;;  %v964_v53 = vmul.f32 -0.2, %v1603_v47 }
 0x18b   : > { %1045 = vst.msk [vmem:[%s2530_s12 + $0x28] sm:$0xff] %vm1039_vm3, %v1969_v42  ;;  %1980 = vpow2.f32 %v1033_v46  ;;  %v1093_v54 = vsub.f32 0.0, %v1635_v51  ;;  %v1222_v58 = vmul.f32 -0.2, %v1635_v51 }
 0x18c   : > { %v1971_v11 = vpop.eup %1970  ;;  %v888_v55 = vmul.f32 1.442695, %v835_v52  ;;  %v1017_v57 = vmul.f32 1.442695, %v964_v53  ;;  %v1086_v60 = vsub.f32 0.0, %v1628_v50 }
 0x18d   : > { %v1973_v59 = vpop.eup %1972  ;;  %1182 = vst.msk [vmem:[%s2530_s12 + $0x68] sm:$0xff] %vm1168_vm4, %v1971_v11  ;;  %v1146_v62 = vmul.f32 1.442695, %v1093_v54  ;;  %v1275_v56 = vmul.f32 1.442695, %v1222_v58 }
 0x18e   : > { %v1975_v61 = vpop.eup %1974  ;;  %1311 = vst.msk [vmem:[%s2530_s12 + $0x68] sm:$0xff] %vm1297_vm5, %v1973_v59  ;;  %1982 = vpow2.f32 %v888_v55  ;;  %v1132_v5 = vmul.f32 1.442695, %v1086_v60  ;;  %v1215_v15 = vmul.f32 -0.2, %v1628_v50 }
 0x18f   : > { %v1977_v0 = vpop.eup %1976  ;;  %1174 = vst.msk [vmem:[%s2530_s12 + $0x28] sm:$0xff] %vm1168_vm4, %v1975_v61  ;;  %1984 = vpow2.f32 %v1017_v57  ;;  %v535_v1 = vpop.xlane.xlu0 %534 }
 0x190   : > { %v1979_v63 = vpop.eup %1978  ;;  %1303 = vst.msk [vmem:[%s2530_s12 + $0x28] sm:$0xff] %vm1297_vm5, %v1977_v0  ;;  %v551_v3 = vpop.xlane.xlu2 %550  ;;  %v1588_v23 = vclamps-f32 %v535_v1, 60.0  ;;  %1986 = vpow2.f32 %v1146_v62  ;;  %v1261_v28 = vmul.f32 1.442695, %v1215_v15 }
 0x191   : > { %v567_v2 = vpop.xlane.xlu1 %566  ;;  %v1981_v4 = vpop.eup %1980  ;;  %940 = vst.msk [vmem:[%s2530_s12 + $0xe8] sm:$0xff] %vm910_vm2, %v1979_v63  ;;  %v1596_v7 = vclamps-f32 %v551_v3, 60.0  ;;  %1988 = vpow2.f32 %v1275_v56 }
 0x192   : > { %v1604_v6 = vclamps-f32 %v567_v2, 60.0  ;;  %1069 = vst.msk [vmem:[%s2530_s12 + $0xe8] sm:$0xff] %vm1039_vm3, %v1981_v4  ;;  %v820_v8 = vsub.f32 0.0, %v1588_v23  ;;  %v949_v9 = vmul.f32 -0.2, %v1588_v23  ;;  %1990 = vpow2.f32 %v1132_v5 }
 0x193   : > { %v828_v13 = vsub.f32 0.0, %v1596_v7  ;;  %v957_v18 = vmul.f32 -0.2, %v1596_v7 }
 0x194   : > { %v836_v16 = vsub.f32 0.0, %v1604_v6  ;;  %v965_v10 = vmul.f32 -0.2, %v1604_v6  ;;  %v1983_v14 = vpop.eup %1982  ;;  %v858_v19 = vmul.f32 1.442695, %v820_v8 }
 0x195   : > { %v1985_v22 = vpop.eup %1984  ;;  %932 = vst.msk [vmem:[%s2530_s12 + $0xa8] sm:$0xff] %vm910_vm2, %v1983_v14  ;;  %v874_v21 = vmul.f32 1.442695, %v828_v13  ;;  %v1003_v24 = vmul.f32 1.442695, %v957_v18 }
 0x196   : > { %v890_v20 = vmul.f32 1.442695, %v836_v16  ;;  %v1019_v12 = vmul.f32 1.442695, %v965_v10  ;;  %1061 = vst.msk [vmem:[%s2530_s12 + $0xa8] sm:$0xff] %vm1039_vm3, %v1985_v22  ;;  %1992 = vpow2.f32 %v858_v19  ;;  %v1987_v27 = vpop.eup %1986 }
 0x197   : > { %v987_v25 = vmul.f32 1.442695, %v949_v9  ;;  %v583_v26 = vpop.xlane.xlu0 %582  ;;  %v1989_v34 = vpop.eup %1988  ;;  %1190 = vst.msk [vmem:[%s2530_s12 + $0xa8] sm:$0xff] %vm1168_vm4, %v1987_v27 }
 0x198   : > { %1994 = vpow2.f32 %v890_v20  ;;  %v635_v29 = vpop.xlane.xlu2 %634  ;;  %v1612_v30 = vclamps-f32 %v583_v26, 60.0  ;;  %1319 = vst.msk [vmem:[%s2530_s12 + $0xa8] sm:$0xff] %vm1297_vm5, %v1989_v34  ;;  %v1991_v33 = vpop.eup %1990 }
 0x199   : > { %1996 = vpow2.f32 %v1019_v12  ;;  %v537_v31 = vpop.xlane.xlu1 %536  ;;  %v1620_v35 = vclamps-f32 %v635_v29, 60.0 }
 0x19a   : > { %1998 = vpow2.f32 %v874_v21  ;;  %v1589_v37 = vclamps-f32 %v537_v31, 60.0  ;;  %v844_v39 = vsub.f32 0.0, %v1612_v30  ;;  %v973_v38 = vmul.f32 -0.2, %v1612_v30 }
 0x19b   : > { %2000 = vpow2.f32 %v1003_v24  ;;  %v1078_v40 = vsub.f32 0.0, %v1620_v35  ;;  %v1207_v41 = vmul.f32 -0.2, %v1620_v35 }
 0x19c   : > { %2002 = vpow2.f32 %v987_v25  ;;  %v821_v43 = vsub.f32 0.0, %v1589_v37  ;;  %v1993_v44 = vpop.eup %1992  ;;  %v906_v45 = vmul.f32 1.442695, %v844_v39  ;;  %v1035_v36 = vmul.f32 1.442695, %v973_v38 }
 0x19d   : > { %2004 = vpow2.f32 %v1261_v28  ;;  %v950_v17 = vmul.f32 -0.2, %v1589_v37  ;;  %917 = vst.msk [vmem:[%s2530_s12 + $0x30] sm:$0xff] %vm910_vm2, %v1993_v44  ;;  %v1116_v46 = vmul.f32 1.442695, %v1078_v40 }
 0x19e   : > { %v1995_v32 = vpop.eup %1994  ;;  %v1245_v47 = vmul.f32 1.442695, %v1207_v41  ;;  %2006 = vpow2.f32 %v906_v45  ;;  %v860_v49 = vmul.f32 1.442695, %v821_v43 }
 0x19f   : > { %v1997_v48 = vpop.eup %1996  ;;  %933 = vst.msk [vmem:[%s2530_s12 + $0xb0] sm:$0xff] %vm910_vm2, %v1995_v32  ;;  %2008 = vpow2.f32 %v1116_v46  ;;  %v989_v50 = vmul.f32 1.442695, %v950_v17  ;;  %v667_v51 = vpop.xlane.xlu0 %666 }
 0x1a0   : > { %v1999_v42 = vpop.eup %1998  ;;  %1062 = vst.msk [vmem:[%s2530_s12 + $0xb0] sm:$0xff] %vm1039_vm3, %v1997_v48  ;;  %2010 = vpow2.f32 %v1245_v47  ;;  %v653_v53 = vpop.xlane.xlu2 %652  ;;  %v1636_v54 = vclamps-f32 %v667_v51, 60.0 }
 0x1a1   : > { %v2001_v52 = vpop.eup %2000  ;;  %925 = vst.msk [vmem:[%s2530_s12 + $0x70] sm:$0xff] %vm910_vm2, %v1999_v42  ;;  %v585_v11 = vpop.xlane.xlu1 %584  ;;  %2012 = vpow2.f32 %v1035_v36  ;;  %v1629_v57 = vclamps-f32 %v653_v53, 60.0 }
 0x1a2   : > { %v2003_v55 = vpop.eup %2002  ;;  %1054 = vst.msk [vmem:[%s2530_s12 + $0x70] sm:$0xff] %vm1039_vm3, %v2001_v52  ;;  %v1613_v58 = vclamps-f32 %v585_v11, 60.0  ;;  %2014 = vpow2.f32 %v860_v49  ;;  %v1094_v60 = vsub.f32 0.0, %v1636_v54  ;;  %v1223_v61 = vmul.f32 -0.2, %v1636_v54 }
 0x1a3   : > { %v2005_v59 = vpop.eup %2004  ;;  %1183 = vst.msk [vmem:[%s2530_s12 + $0x70] sm:$0xff] %vm1168_vm4, %v1991_v33  ;;  %2016 = vpow2.f32 %v989_v50  ;;  %v1087_v56 = vsub.f32 0.0, %v1629_v57  ;;  %v1216_v2 = vmul.f32 -0.2, %v1629_v57 }
 0x1a4   : > { %1312 = vst.msk [vmem:[%s2530_s12 + $0x70] sm:$0xff] %vm1297_vm5, %v2005_v59  ;;  %v845_v62 = vsub.f32 0.0, %v1613_v58  ;;  %v2007_v0 = vpop.eup %2006  ;;  %v1148_v1 = vmul.f32 1.442695, %v1094_v60  ;;  %v1277_v3 = vmul.f32 1.442695, %v1223_v61 }
 0x1a5   : > { %1046 = vst.msk [vmem:[%s2530_s12 + $0x30] sm:$0xff] %vm1039_vm3, %v2003_v55  ;;  %v2009_v63 = vpop.eup %2008  ;;  %v974_v5 = vmul.f32 -0.2, %v1613_v58  ;;  %v1134_v9 = vmul.f32 1.442695, %v1087_v56 }
 0x1a6   : > { %941 = vst.msk [vmem:[%s2530_s12 + $0xf0] sm:$0xff] %vm910_vm2, %v2007_v0  ;;  %v2011_v23 = vpop.eup %2010  ;;  %2018 = vpow2.f32 %v1148_v1  ;;  %v908_v4 = vmul.f32 1.442695, %v845_v62  ;;  %v1263_v18 = vmul.f32 1.442695, %v1216_v2 }
 0x1a7   : > { %1175 = vst.msk [vmem:[%s2530_s12 + $0x30] sm:$0xff] %vm1168_vm4, %v2009_v63  ;;  %v2013_v6 = vpop.eup %2012  ;;  %v553_v7 = vpop.xlane.xlu0 %552  ;;  %v1037_v16 = vmul.f32 1.442695, %v974_v5  ;;  %2020 = vpow2.f32 %v1277_v3 }
 0x1a8   : > { %1304 = vst.msk [vmem:[%s2530_s12 + $0x30] sm:$0xff] %vm1297_vm5, %v2011_v23  ;;  %v2015_v8 = vpop.eup %2014  ;;  %v569_v10 = vpop.xlane.xlu2 %568  ;;  %v1597_v13 = vclamps-f32 %v553_v7, 60.0  ;;  %2022 = vpow2.f32 %v908_v4 }
 0x1a9   : > { %1070 = vst.msk [vmem:[%s2530_s12 + $0xf0] sm:$0xff] %vm1039_vm3, %v2013_v6  ;;  %v669_v14 = vpop.xlane.xlu1 %668  ;;  %v2017_v15 = vpop.eup %2016  ;;  %v1605_v19 = vclamps-f32 %v569_v10, 60.0  ;;  %2024 = vpow2.f32 %v1037_v16 }
 0x1aa   : > { %918 = vst.msk [vmem:[%s2530_s12 + $0x38] sm:$0xff] %vm910_vm2, %v2015_v8  ;;  %v1637_v22 = vclamps-f32 %v669_v14, 60.0  ;;  %v829_v20 = vsub.f32 0.0, %v1597_v13  ;;  %v958_v12 = vmul.f32 -0.2, %v1597_v13  ;;  %2026 = vpow2.f32 %v1134_v9 }
 0x1ab   : > { %1047 = vst.msk [vmem:[%s2530_s12 + $0x38] sm:$0xff] %vm1039_vm3, %v2017_v15  ;;  %v837_v21 = vsub.f32 0.0, %v1605_v19  ;;  %v966_v24 = vmul.f32 -0.2, %v1605_v19  ;;  %2028 = vpow2.f32 %v1263_v18 }
 0x1ac   : > { %v1095_v25 = vsub.f32 0.0, %v1637_v22  ;;  %v2019_v26 = vpop.eup %2018  ;;  %v876_v27 = vmul.f32 1.442695, %v829_v20  ;;  %v1005_v28 = vmul.f32 1.442695, %v958_v12 }
 0x1ad   : > { %v1224_v29 = vmul.f32 -0.2, %v1637_v22  ;;  %1191 = vst.msk [vmem:[%s2530_s12 + $0xb0] sm:$0xff] %vm1168_vm4, %v2019_v26  ;;  %v892_v30 = vmul.f32 1.442695, %v837_v21  ;;  %v2021_v35 = vpop.eup %2020 }
 0x1ae   : > { %v1021_v31 = vmul.f32 1.442695, %v966_v24  ;;  %2030 = vpow2.f32 %v876_v27  ;;  %v1150_v34 = vmul.f32 1.442695, %v1095_v25  ;;  %v2023_v38 = vpop.eup %2022  ;;  %1320 = vst.msk [vmem:[%s2530_s12 + $0xb0] sm:$0xff] %vm1297_vm5, %v2021_v35 }
 0x1af   : > { %2032 = vpow2.f32 %v892_v30  ;;  %v1279_v37 = vmul.f32 1.442695, %v1224_v29  ;;  %v637_v39 = vpop.xlane.xlu0 %636  ;;  %v2025_v43 = vpop.eup %2024  ;;  %942 = vst.msk [vmem:[%s2530_s12 + $0xf8] sm:$0xff] %vm910_vm2, %v2023_v38 }
 0x1b0   : > { %2034 = vpow2.f32 %v1021_v31  ;;  %v683_v33 = vpop.xlane.xlu2 %682  ;;  %v1621_v40 = vclamps-f32 %v637_v39, 60.0  ;;  %v2027_v36 = vpop.eup %2026  ;;  %1071 = vst.msk [vmem:[%s2530_s12 + $0xf8] sm:$0xff] %vm1039_vm3, %v2025_v43 }
 0x1b1   : > { %v681_v41 = vpop.xlane.xlu1 %680  ;;  %2036 = vpow2.f32 %v1005_v28  ;;  %v1644_v44 = vclamps-f32 %v683_v33, 60.0  ;;  %v2029_v46 = vpop.eup %2028 }
 0x1b2   : > { %v1643_v45 = vclamps-f32 %v681_v41, 60.0  ;;  %2038 = vpow2.f32 %v1150_v34  ;;  %v1079_v17 = vsub.f32 0.0, %v1621_v40  ;;  %v1208_v32 = vmul.f32 -0.2, %v1621_v40 }
 0x1b3   : > { %2040 = vpow2.f32 %v1279_v37  ;;  %v1102_v47 = vsub.f32 0.0, %v1644_v44  ;;  %v1231_v48 = vmul.f32 -0.2, %v1644_v44 }
 0x1b4   : > { %v1101_v49 = vsub.f32 0.0, %v1643_v45  ;;  %v2031_v42 = vpop.eup %2030  ;;  %v1118_v50 = vmul.f32 1.442695, %v1079_v17  ;;  %v1247_v51 = vmul.f32 1.442695, %v1208_v32 }
 0x1b5   : > { %v1230_v52 = vmul.f32 -0.2, %v1643_v45  ;;  %v2033_v53 = vpop.eup %2032  ;;  %926 = vst.msk [vmem:[%s2530_s12 + $0x78] sm:$0xff] %vm910_vm2, %v2031_v42  ;;  %v1164_v54 = vmul.f32 1.442695, %v1102_v47 }
 0x1b6   : > { %v1293_v11 = vmul.f32 1.442695, %v1231_v48  ;;  %v2035_v55 = vpop.eup %2034  ;;  %934 = vst.msk [vmem:[%s2530_s12 + $0xb8] sm:$0xff] %vm910_vm2, %v2033_v53  ;;  %2042 = vpow2.f32 %v1118_v50  ;;  %v1162_v57 = vmul.f32 1.442695, %v1101_v49 }
 0x1b7   : > { %v2037_v58 = vpop.eup %2036  ;;  %1063 = vst.msk [vmem:[%s2530_s12 + $0xb8] sm:$0xff] %vm1039_vm3, %v2035_v55  ;;  %2044 = vpow2.f32 %v1164_v54  ;;  %v1291_v59 = vmul.f32 1.442695, %v1230_v52  ;;  %v685_v60 = vpop.xlane.xlu0 %684 }
 0x1b8   : > { %v2039_v61 = vpop.eup %2038  ;;  %1055 = vst.msk [vmem:[%s2530_s12 + $0x78] sm:$0xff] %vm1039_vm3, %v2037_v58  ;;  %2046 = vpow2.f32 %v1293_v11  ;;  %v1645_v62 = vclamps-f32 %v685_v60, 60.0 }
 0x1b9   : > { %v2041_v0 = vpop.eup %2040  ;;  %1184 = vst.msk [vmem:[%s2530_s12 + $0x78] sm:$0xff] %vm1168_vm4, %v2027_v36  ;;  %2048 = vpow2.f32 %v1247_v51 }
 0x1ba   : > { %1313 = vst.msk [vmem:[%s2530_s12 + $0x78] sm:$0xff] %vm1297_vm5, %v2029_v46  ;;  %2050 = vpow2.f32 %v1162_v57  ;;  %v1103_v56 = vsub.f32 0.0, %v1645_v62  ;;  %v1232_v1 = vmul.f32 -0.2, %v1645_v62 }
 0x1bb   : > { %1192 = vst.msk [vmem:[%s2530_s12 + $0xb8] sm:$0xff] %vm1168_vm4, %v2039_v61  ;;  %2052 = vpow2.f32 %v1291_v59 }
 0x1bc   : > { %v2043_v63 = vpop.eup %2042  ;;  %1321 = vst.msk [vmem:[%s2530_s12 + $0xb8] sm:$0xff] %vm1297_vm5, %v2041_v0  ;;  %v1166_v2 = vmul.f32 1.442695, %v1103_v56  ;;  %v1295_v3 = vmul.f32 1.442695, %v1232_v1 }
 0x1bd   : > { %v2045_v23 = vpop.eup %2044  ;;  %1176 = vst.msk [vmem:[%s2530_s12 + $0x38] sm:$0xff] %vm1168_vm4, %v2043_v63 }
 0x1be   : > { %v2047_v4 = vpop.eup %2046  ;;  %1199 = vst.msk [vmem:[%s2530_s12 + $0xf0] sm:$0xff] %vm1168_vm4, %v2045_v23  ;;  %2054 = vpow2.f32 %v1166_v2 }
 0x1bf   : > { %v2049_v5 = vpop.eup %2048  ;;  %1328 = vst.msk [vmem:[%s2530_s12 + $0xf0] sm:$0xff] %vm1297_vm5, %v2047_v4  ;;  %2056 = vpow2.f32 %v1295_v3 }
 0x1c0   : > { %v2051_v6 = vpop.eup %2050  ;;  %1305 = vst.msk [vmem:[%s2530_s12 + $0x38] sm:$0xff] %vm1297_vm5, %v2049_v5 }
 0x1c1   : > { %v2053_v7 = vpop.eup %2052  ;;  %1198 = vst.msk [vmem:[%s2530_s12 + $0xe8] sm:$0xff] %vm1168_vm4, %v2051_v6 }
 0x1c2   : > { %1327 = vst.msk [vmem:[%s2530_s12 + $0xe8] sm:$0xff] %vm1297_vm5, %v2053_v7 }
 0x1c4   : > { %v2055_v8 = vpop.eup %2054 }
 0x1c5   : > { %v2057_v9 = vpop.eup %2056  ;;  %1200 = vst.msk [vmem:[%s2530_s12 + $0xf8] sm:$0xff] %vm1168_vm4, %v2055_v8 }
 0x1c6   : > { %1329 = vst.msk [vmem:[%s2530_s12 + $0xf8] sm:$0xff] %vm1297_vm5, %v2057_v9 }
 0x1c7 PF: > { %p1765_p4 = scmp.ge.s32.totalorder %s2120_s21, 2  ;;  %s1468_s28 = sand.u32 1, %s2108_s18  }
 0x1c8   : > { %s1469_s9 = scalar_lea.sflag [#allocation3], %s1468_s28 }
 0x1c9   : > { %p1762_p5 = pnand %p1765_p4, %p2196_p6 }
 0x1cb   : > { %p1763_p7 = pneg %p1762_p5 }
 0x1cd   : > { %2103 = dma.done.wait (%p1763_p7), %s1469_s9, 2048  }
 0x1ce   : > { %2105 = vsyncadd (%p1763_p7), %s1469_s9, 4294965248  ;;  %p16_p8 = scmp.ge.s32.totalorder %s2179_s24, 6   ;;  %s2863_s18 = smov %s2112_s19 }
 0x1cf   : > { %s2864_s19 = smov %s2116_s20  ;;  %s2865_s20 = smov %s2190_s27 }
 0x1d0   : > { %s2866_s21 = smov %s2179_s24  ;;  %18 = sbr.rel (!%p16_p8) target bundleno = 3 (0x3), region = 83 }
 0x1d5   :  { %1483 = vsyncpa [#allocation3], 1 }
 0x1d6   :  { %1485 = vsyncpa [#allocation3 + $0x1], 1 }

</bundles_post_ra>
